<compile_context>
chip_gen: v6e
topology: v6e:2x2x1
jax: 0.10.0
libtpu: 0.0.40
codegen_flags: <defaults>
</compile_context>

<pallas_src>
import math

import jax
import jax.numpy as jnp
from jax.experimental import pallas as pl
from jax.experimental.pallas import tpu as pltpu


def mha_kernel(q_ref, k_ref, v_ref, valid_ref,
               wq_ref, wk_ref, wv_ref, b_qkv_ref, wo_ref, bo_ref,
               o_ref):
    Bt, S, D = q_ref.shape
    Dk = k_ref.shape[-1]
    M = Bt * S

    b_qkv = b_qkv_ref[...]                       # (3, D) f32: [bq*scale | bk | bv]

    # ---- batch-folded projections: (Bt*S, feat) @ (feat, D) on the MXU -------
    # Leading-dim merges only (S multiple of 8, lane tiles intact) -> free reshapes.
    xq = q_ref[...].reshape(M, D)                # bf16
    xk = k_ref[...].reshape(M, Dk)               # bf16
    xv = v_ref[...].reshape(M, D)                # bf16

    q = jnp.dot(xq, wq_ref[...], preferred_element_type=jnp.float32) + b_qkv[0:1]
    k = jnp.dot(xk, wk_ref[...], preferred_element_type=jnp.float32) + b_qkv[1:2]
    v = jnp.dot(xv, wv_ref[...], preferred_element_type=jnp.float32) + b_qkv[2:3]

    q3 = q.reshape(Bt, S, D).astype(jnp.bfloat16)
    k3 = k.reshape(Bt, S, D).astype(jnp.bfloat16)
    v3 = v.reshape(Bt, S, D).astype(jnp.bfloat16)

    # ---- per-batch-row attention: scores scale already folded into wq/bq -----
    scores = jnp.einsum('bqd,bkd->bqk', q3, k3,
                        preferred_element_type=jnp.float32)       # (Bt, S, S) f32

    # key-padding mask (masked_fill(mask == 0, -1e9) semantics), (Bt,1,S) broadcast
    scores = jnp.where(valid_ref[...] > 0.0, scores, jnp.float32(-1e9))

    # numerically stable softmax in f32; reciprocal on the EUP
    scores = scores - jnp.max(scores, axis=-1, keepdims=True)
    p = jnp.exp(scores)
    p = p * pl.reciprocal(jnp.sum(p, axis=-1, keepdims=True), approx=True)

    attn = jnp.einsum('bqk,bkd->bqd', p.astype(jnp.bfloat16), v3,
                      preferred_element_type=jnp.float32)          # (Bt, S, D) f32

    # eval-mode head collapse: out Linear reduces exactly to attn @ wo_eff + bo
    out = jnp.dot(attn.reshape(M, D).astype(jnp.bfloat16), wo_ref[...],
                  preferred_element_type=jnp.float32) + bo_ref[...]
    o_ref[...] = out.reshape(Bt, S, D).astype(o_ref.dtype)


def _pick_block_b(bs, S, target_m=256, min_steps=2):
    """Largest batch block that still leaves >= min_steps grid steps (v7x dual-TC),
    preferring the smallest block whose Bt*S already reaches the MXU-height target."""
    divisors = [d for d in range(1, bs + 1) if bs % d == 0]
    ok = [d for d in divisors if bs // d >= min_steps] or [divisors[0]]
    for d in ok:
        if d * S >= target_m:
            return d
    return ok[-1]


def multihead_attention(q_in, k_in, v_in, key_lens, params, *, block_b=None):
    """Pallas forward of MultiHeadAttention (eval mode, prefix key-padding mask)."""
    bs, S, D = q_in.shape
    Dk = k_in.shape[-1]
    Bt = block_b if block_b is not None else _pick_block_b(bs, S)
    assert bs % Bt == 0
    nb = bs // Bt

    # O(bs*S) validity rows instead of a (bs,S,S) mask operand.
    valid = (jnp.arange(S, dtype=jnp.int32)[None, :]
             < key_lens.astype(jnp.int32)[:, None]).astype(jnp.float32)
    valid = valid.reshape(bs, 1, S)

    # bf16 MXU operands (accumulation stays f32 inside the kernel).
    qb = q_in.astype(jnp.bfloat16)
    kb = k_in.astype(jnp.bfloat16)
    vb = v_in.astype(jnp.bfloat16)

    flops = int(2 * bs * S * (3 * D * D + Dk * D + 2 * S * D))
    bytes_accessed = int(
        (qb.size + kb.size + vb.size) * 2 + valid.size * 4
        + (params["wq_s"].size + params["wk"].size + params["wv"].size
           + params["wo_eff"].size) * 2
        + (params["b_qkv"].size + params["bo"].size) * 4
        + bs * S * D * 4)

    return pl.pallas_call(
        mha_kernel,
        out_shape=jax.ShapeDtypeStruct((bs, S, D), jnp.float32),
        grid=(nb,),
        in_specs=[
            pl.BlockSpec((Bt, S, D), lambda b: (b, 0, 0)),    # q_in (lane-dense)
            pl.BlockSpec((Bt, S, Dk), lambda b: (b, 0, 0)),   # k_in (D + k_mode)
            pl.BlockSpec((Bt, S, D), lambda b: (b, 0, 0)),    # v_in (lane-dense)
            pl.BlockSpec((Bt, 1, S), lambda b: (b, 0, 0)),    # key-padding validity
            pl.BlockSpec((D, D), lambda b: (0, 0)),           # wq (pre-scaled)
            pl.BlockSpec((Dk, D), lambda b: (0, 0)),          # wk
            pl.BlockSpec((D, D), lambda b: (0, 0)),           # wv
            pl.BlockSpec((3, D), lambda b: (0, 0)),           # [bq*scale | bk | bv]
            pl.BlockSpec((D, D), lambda b: (0, 0)),           # collapsed W_out
            pl.BlockSpec((1, D), lambda b: (0, 0)),           # out bias
        ],
        out_specs=pl.BlockSpec((Bt, S, D), lambda b: (b, 0, 0)),
        compiler_params=pltpu.CompilerParams(dimension_semantics=("parallel",)),
        cost_estimate=pl.CostEstimate(flops=flops, transcendentals=bs * S * S,
                                      bytes_accessed=bytes_accessed),
    )(qb, kb, vb, valid,
      params["wq_s"], params["wk"], params["wv"], params["b_qkv"],
      params["wo_eff"], params["bo"])


# ---------------- parameter construction (deterministic, torch-Linear init) ----------------
def _init_linear(key, fan_in, fan_out):
    k1, k2 = jax.random.split(key)
    bound = 1.0 / math.sqrt(fan_in)
    w_t = jax.random.uniform(k1, (fan_in, fan_out), jnp.float32, -bound, bound)
    b = jax.random.uniform(k2, (1, fan_out), jnp.float32, -bound, bound)
    return w_t, b


def make_mha_params(key, D, H, K):
    ks = jax.random.split(key, 4)
    wq, bq = _init_linear(ks[0], D, D)
    wk, bk = _init_linear(ks[1], D + K, D)
    wv, bv = _init_linear(ks[2], D, D)
    wo_full, bo = _init_linear(ks[3], H * D, D)          # (H*D, D), transposed out-proj

    scale = 1.0 / math.sqrt(D)                           # d_k == d_model in the module
    wo_eff = wo_full.reshape(H, D, D).sum(axis=0)        # identical heads at eval -> exact

    return dict(
        # kernel operands: MXU weights in bf16, biases f32; score scale folded into wq/bq
        wq_s=(wq * scale).astype(jnp.bfloat16),
        wk=wk.astype(jnp.bfloat16),
        wv=wv.astype(jnp.bfloat16),
        wo_eff=wo_eff.astype(jnp.bfloat16),
        b_qkv=jnp.concatenate([bq * scale, bk, bv], axis=0),   # (3, D) f32
        bo=bo,
        # un-fused f32 weights, kept only for the pure-JAX reference
        _wq=wq, _bq=bq, _wk=wk, _bk=bk, _wv=wv, _bv=bv, _wo_full=wo_full,
    )


# ---------------- pure-JAX reference (literal port of the torch module, eval mode) ----------------
def ref_mha(q_in, k_in, v_in, mask, p, H):
    bs, S, D = q_in.shape
    q = q_in @ p["_wq"] + p["_bq"][0]
    k = k_in @ p["_wk"] + p["_bk"][0]
    v = v_in @ p["_wv"] + p["_bv"][0]

    def heads(t):                                   # unsqueeze(-2).repeat(h).transpose(1,2)
        return jnp.repeat(t[:, :, None, :], H, axis=2).transpose(0, 2, 1, 3)

    qh, kh, vh = heads(q), heads(k), heads(v)
    scores = qh @ kh.transpose(0, 1, 3, 2) / math.sqrt(D)
    scores = jnp.where(mask[:, None] == 0, -1e9, scores)       # mask.unsqueeze(1)
    scores = jax.nn.softmax(scores, axis=-1)                    # dropout = identity (eval)
    out = scores @ vh
    concat = out.transpose(0, 2, 1, 3).reshape(bs, S, H * D)
    return concat @ p["_wo_full"] + p["bo"][0]


if __name__ == "__main__":
    # d_model=128 keeps every activation block lane-dense; bs=8, S=32 gives
    # Bt=4 -> M = Bt*S = 128 MXU rows per dispatch and 2 parallel grid steps.
    bs, S, D, H, K = 8, 32, 128, 4, 4

    root = jax.random.PRNGKey(0)
    kq, kk, kv, kp = jax.random.split(root, 4)

    q_in = jax.random.normal(kq, (bs, S, D), jnp.float32)
    k_in = jax.random.normal(kk, (bs, S, D + K), jnp.float32)   # k carries env features
    v_in = jax.random.normal(kv, (bs, S, D), jnp.float32)

    # per-batch valid key lengths (prefix key-padding mask, as produced upstream)
    key_lens = jnp.clip(S - 3 * jnp.arange(bs, dtype=jnp.int32), 1, S)
    valid2d = (jnp.arange(S)[None, :] < key_lens[:, None]).astype(jnp.int32)     # (bs, S)
    mask = jnp.broadcast_to(valid2d[:, None, :], (bs, S, S)).astype(jnp.int32)   # (bs, S, S)

    params = make_mha_params(kp, D, H, K)

    # --- Pallas forward ---
    out = jax.block_until_ready(multihead_attention(q_in, k_in, v_in, key_lens, params))

    # --- reference check (f32 reference vs bf16-MXU kernel) ---
    ref = ref_mha(q_in, k_in, v_in, mask, params, H)

    assert out.shape == (bs, S, D)
    err = float(jnp.max(jnp.abs(out - ref)))
    assert err < 2e-2, err        # bf16 MXU operands + approx reciprocal tolerance
    print("KERNEL_OK")
</pallas_src>

<mosaic_0001>
module attributes {stable_mosaic.version = 11 : i64} {
  func.func @mha_kernel(%arg0: i32, %arg1: memref<4x32x128xbf16, #tpu.memory_space<vmem>>, %arg2: memref<4x32x132xbf16, #tpu.memory_space<vmem>>, %arg3: memref<4x32x128xbf16, #tpu.memory_space<vmem>>, %arg4: memref<4x1x32xf32, #tpu.memory_space<vmem>>, %arg5: memref<128x128xbf16, #tpu.memory_space<vmem>>, %arg6: memref<132x128xbf16, #tpu.memory_space<vmem>>, %arg7: memref<128x128xbf16, #tpu.memory_space<vmem>>, %arg8: memref<3x128xf32, #tpu.memory_space<vmem>>, %arg9: memref<128x128xbf16, #tpu.memory_space<vmem>>, %arg10: memref<1x128xf32, #tpu.memory_space<vmem>>, %arg11: memref<4x32x128xf32, #tpu.memory_space<vmem>>) attributes {dimension_semantics = [#tpu.dimension_semantics<parallel>], iteration_bounds = array<i64: 2>, scalar_prefetch = 0 : i64, scratch_operands = 0 : i64, tpu.core_type = #tpu.core_type<tc>, window_params = [{transform_indices = @transform_0, window_bounds = array<i64: 4, 32, 128>}, {transform_indices = @transform_1, window_bounds = array<i64: 4, 32, 132>}, {transform_indices = @transform_2, window_bounds = array<i64: 4, 32, 128>}, {transform_indices = @transform_3, window_bounds = array<i64: 4, 1, 32>}, {pipeline_mode = #tpu.pipeline_mode<synchronous>, transform_indices = @transform_4, window_bounds = array<i64: 128, 128>}, {pipeline_mode = #tpu.pipeline_mode<synchronous>, transform_indices = @transform_5, window_bounds = array<i64: 132, 128>}, {pipeline_mode = #tpu.pipeline_mode<synchronous>, transform_indices = @transform_6, window_bounds = array<i64: 128, 128>}, {pipeline_mode = #tpu.pipeline_mode<synchronous>, transform_indices = @transform_7, window_bounds = array<i64: 3, 128>}, {pipeline_mode = #tpu.pipeline_mode<synchronous>, transform_indices = @transform_8, window_bounds = array<i64: 128, 128>}, {pipeline_mode = #tpu.pipeline_mode<synchronous>, transform_indices = @transform_9, window_bounds = array<i64: 1, 128>}, {transform_indices = @transform_10, window_bounds = array<i64: 4, 32, 128>}]} {
    %c0 = arith.constant 0 : index
    %c0_0 = arith.constant 0 : index
    %0 = vector.load %arg8[%c0, %c0_0] : memref<3x128xf32, #tpu.memory_space<vmem>>, vector<3x128xf32>
    %c0_1 = arith.constant 0 : index
    %c0_2 = arith.constant 0 : index
    %c0_3 = arith.constant 0 : index
    %1 = vector.load %arg1[%c0_1, %c0_2, %c0_3] : memref<4x32x128xbf16, #tpu.memory_space<vmem>>, vector<4x32x128xbf16>
    %2 = vector.shape_cast %1 : vector<4x32x128xbf16> to vector<128x128xbf16>
    %c0_4 = arith.constant 0 : index
    %c0_5 = arith.constant 0 : index
    %c0_6 = arith.constant 0 : index
    %3 = vector.load %arg2[%c0_4, %c0_5, %c0_6] : memref<4x32x132xbf16, #tpu.memory_space<vmem>>, vector<4x32x132xbf16>
    %4 = vector.shape_cast %3 : vector<4x32x132xbf16> to vector<128x132xbf16>
    %c0_7 = arith.constant 0 : index
    %c0_8 = arith.constant 0 : index
    %c0_9 = arith.constant 0 : index
    %5 = vector.load %arg3[%c0_7, %c0_8, %c0_9] : memref<4x32x128xbf16, #tpu.memory_space<vmem>>, vector<4x32x128xbf16>
    %6 = vector.shape_cast %5 : vector<4x32x128xbf16> to vector<128x128xbf16>
    %c0_10 = arith.constant 0 : index
    %c0_11 = arith.constant 0 : index
    %7 = vector.load %arg5[%c0_10, %c0_11] : memref<128x128xbf16, #tpu.memory_space<vmem>>, vector<128x128xbf16>
    %cst = arith.constant dense<0.000000e+00> : vector<128x128xf32>
    %8 = tpu.matmul %2, %7, %cst {dimension_numbers = #tpu.dot_dimension_numbers<[1], [0], [0], [1], [0, 0, 1, 1], [], []>} : vector<128x128xbf16>, vector<128x128xbf16>, vector<128x128xf32> -> vector<128x128xf32>
    %9 = vector.extract_strided_slice %0 {offsets = [0, 0], sizes = [1, 128], strides = [1, 1]} : vector<3x128xf32> to vector<1x128xf32>
    %10 = vector.broadcast %9 : vector<1x128xf32> to vector<128x128xf32>
    %11 = arith.addf %8, %10 : vector<128x128xf32>
    %c0_12 = arith.constant 0 : index
    %c0_13 = arith.constant 0 : index
    %12 = vector.load %arg6[%c0_12, %c0_13] : memref<132x128xbf16, #tpu.memory_space<vmem>>, vector<132x128xbf16>
    %cst_14 = arith.constant dense<0.000000e+00> : vector<128x128xf32>
    %13 = tpu.matmul %4, %12, %cst_14 {dimension_numbers = #tpu.dot_dimension_numbers<[1], [0], [0], [1], [0, 0, 1, 1], [], []>} : vector<128x132xbf16>, vector<132x128xbf16>, vector<128x128xf32> -> vector<128x128xf32>
    %14 = vector.extract_strided_slice %0 {offsets = [1, 0], sizes = [1, 128], strides = [1, 1]} : vector<3x128xf32> to vector<1x128xf32>
    %15 = vector.broadcast %14 : vector<1x128xf32> to vector<128x128xf32>
    %16 = arith.addf %13, %15 : vector<128x128xf32>
    %c0_15 = arith.constant 0 : index
    %c0_16 = arith.constant 0 : index
    %17 = vector.load %arg7[%c0_15, %c0_16] : memref<128x128xbf16, #tpu.memory_space<vmem>>, vector<128x128xbf16>
    %cst_17 = arith.constant dense<0.000000e+00> : vector<128x128xf32>
    %18 = tpu.matmul %6, %17, %cst_17 {dimension_numbers = #tpu.dot_dimension_numbers<[1], [0], [0], [1], [0, 0, 1, 1], [], []>} : vector<128x128xbf16>, vector<128x128xbf16>, vector<128x128xf32> -> vector<128x128xf32>
    %19 = vector.extract_strided_slice %0 {offsets = [2, 0], sizes = [1, 128], strides = [1, 1]} : vector<3x128xf32> to vector<1x128xf32>
    %20 = vector.broadcast %19 : vector<1x128xf32> to vector<128x128xf32>
    %21 = arith.addf %18, %20 : vector<128x128xf32>
    %22 = vector.shape_cast %11 : vector<128x128xf32> to vector<4x32x128xf32>
    %23 = arith.truncf %22 : vector<4x32x128xf32> to vector<4x32x128xbf16>
    %24 = vector.shape_cast %16 : vector<128x128xf32> to vector<4x32x128xf32>
    %25 = arith.truncf %24 : vector<4x32x128xf32> to vector<4x32x128xbf16>
    %26 = vector.shape_cast %21 : vector<128x128xf32> to vector<4x32x128xf32>
    %27 = arith.truncf %26 : vector<4x32x128xf32> to vector<4x32x128xbf16>
    "tpu.trace_start"() <{level = 10 : i32, message = "bqd,bkd->bqk"}> : () -> ()
    %cst_18 = arith.constant dense<0.000000e+00> : vector<4x32x32xf32>
    %28 = tpu.matmul %23, %25, %cst_18 {dimension_numbers = #tpu.dot_dimension_numbers<[2], [2], [1], [1], [0, 0, 0, 1, 1, 1], [0], [0]>} : vector<4x32x128xbf16>, vector<4x32x128xbf16>, vector<4x32x32xf32> -> vector<4x32x32xf32>
    "tpu.trace_stop"() : () -> ()
    %c0_19 = arith.constant 0 : index
    %c0_20 = arith.constant 0 : index
    %c0_21 = arith.constant 0 : index
    %29 = vector.load %arg4[%c0_19, %c0_20, %c0_21] : memref<4x1x32xf32, #tpu.memory_space<vmem>>, vector<4x1x32xf32>
    %cst_22 = arith.constant 0.000000e+00 : f32
    %30 = vector.broadcast %cst_22 : f32 to vector<4x1x32xf32>
    %31 = arith.cmpf ogt, %29, %30 : vector<4x1x32xf32>
    %cst_23 = arith.constant -1.000000e+09 : f32
    %32 = vector.shape_cast %31 : vector<4x1x32xi1> to vector<4x1x32xi1>
    %33 = vector.broadcast %32 : vector<4x1x32xi1> to vector<4x32x32xi1>
    %34 = vector.broadcast %cst_23 : f32 to vector<4x32x32xf32>
    %35 = arith.select %33, %28, %34 : vector<4x32x32xi1>, vector<4x32x32xf32>
    %cst_24 = arith.constant dense<0xFF800000> : vector<4x32xf32>
    %36 = vector.multi_reduction <maximumf>, %35, %cst_24 [2] : vector<4x32x32xf32> to vector<4x32xf32>
    %37 = vector.shape_cast %36 : vector<4x32xf32> to vector<4x32x1xf32>
    %38 = vector.broadcast %37 : vector<4x32x1xf32> to vector<4x32x32xf32>
    %39 = arith.subf %35, %38 : vector<4x32x32xf32>
    %40 = math.exp %39 : vector<4x32x32xf32>
    %cst_25 = arith.constant dense<0.000000e+00> : vector<4x32xf32>
    %41 = vector.multi_reduction <add>, %40, %cst_25 [2] : vector<4x32x32xf32> to vector<4x32xf32>
    %42 = vector.shape_cast %41 : vector<4x32xf32> to vector<4x32x1xf32>
    %43 = tpu.reciprocal %42 {approx = true} : vector<4x32x1xf32> -> vector<4x32x1xf32>
    %44 = vector.broadcast %43 : vector<4x32x1xf32> to vector<4x32x32xf32>
    %45 = arith.mulf %40, %44 : vector<4x32x32xf32>
    %46 = arith.truncf %45 : vector<4x32x32xf32> to vector<4x32x32xbf16>
    "tpu.trace_start"() <{level = 10 : i32, message = "bqk,bkd->bqd"}> : () -> ()
    %cst_26 = arith.constant dense<0.000000e+00> : vector<4x32x128xf32>
    %47 = tpu.matmul %46, %27, %cst_26 {dimension_numbers = #tpu.dot_dimension_numbers<[2], [1], [1], [2], [0, 0, 0, 1, 1, 2], [0], [0]>} : vector<4x32x32xbf16>, vector<4x32x128xbf16>, vector<4x32x128xf32> -> vector<4x32x128xf32>
    "tpu.trace_stop"() : () -> ()
    %48 = vector.shape_cast %47 : vector<4x32x128xf32> to vector<128x128xf32>
    %49 = arith.truncf %48 : vector<128x128xf32> to vector<128x128xbf16>
    %c0_27 = arith.constant 0 : index
    %c0_28 = arith.constant 0 : index
    %50 = vector.load %arg9[%c0_27, %c0_28] : memref<128x128xbf16, #tpu.memory_space<vmem>>, vector<128x128xbf16>
    %cst_29 = arith.constant dense<0.000000e+00> : vector<128x128xf32>
    %51 = tpu.matmul %49, %50, %cst_29 {dimension_numbers = #tpu.dot_dimension_numbers<[1], [0], [0], [1], [0, 0, 1, 1], [], []>} : vector<128x128xbf16>, vector<128x128xbf16>, vector<128x128xf32> -> vector<128x128xf32>
    %c0_30 = arith.constant 0 : index
    %c0_31 = arith.constant 0 : index
    %52 = vector.load %arg10[%c0_30, %c0_31] : memref<1x128xf32, #tpu.memory_space<vmem>>, vector<1x128xf32>
    %53 = vector.broadcast %52 : vector<1x128xf32> to vector<128x128xf32>
    %54 = arith.addf %51, %53 : vector<128x128xf32>
    %55 = vector.shape_cast %54 : vector<128x128xf32> to vector<4x32x128xf32>
    %c0_32 = arith.constant 0 : index
    %c0_33 = arith.constant 0 : index
    %c0_34 = arith.constant 0 : index
    %56 = vector.load %arg11[%c0_32, %c0_33, %c0_34] : memref<4x32x128xf32, #tpu.memory_space<vmem>>, vector<4x32x128xf32>
    tpu.vector_store %arg11[%c0_32, %c0_33, %c0_34], %55 {strides = array<i32>} : memref<4x32x128xf32, #tpu.memory_space<vmem>>, vector<4x32x128xf32>,
    return
  }
  func.func @transform_0(%arg0: i32) -> (i32, i32, i32) {
    %c0_i32 = arith.constant 0 : i32
    %c0_i32_0 = arith.constant 0 : i32
    %c0_i32_1 = arith.constant 0 : i32
    return %arg0, %c0_i32, %c0_i32_0 : i32, i32, i32
  }
  func.func @transform_1(%arg0: i32) -> (i32, i32, i32) {
    %c0_i32 = arith.constant 0 : i32
    %c0_i32_0 = arith.constant 0 : i32
    %c0_i32_1 = arith.constant 0 : i32
    return %arg0, %c0_i32, %c0_i32_0 : i32, i32, i32
  }
  func.func @transform_2(%arg0: i32) -> (i32, i32, i32) {
    %c0_i32 = arith.constant 0 : i32
    %c0_i32_0 = arith.constant 0 : i32
    %c0_i32_1 = arith.constant 0 : i32
    return %arg0, %c0_i32, %c0_i32_0 : i32, i32, i32
  }
  func.func @transform_3(%arg0: i32) -> (i32, i32, i32) {
    %c0_i32 = arith.constant 0 : i32
    %c0_i32_0 = arith.constant 0 : i32
    %c0_i32_1 = arith.constant 0 : i32
    return %arg0, %c0_i32, %c0_i32_0 : i32, i32, i32
  }
  func.func @transform_4(%arg0: i32) -> (i32, i32) {
    %c0_i32 = arith.constant 0 : i32
    %c0_i32_0 = arith.constant 0 : i32
    %c0_i32_1 = arith.constant 0 : i32
    return %c0_i32, %c0_i32_0 : i32, i32
  }
  func.func @transform_5(%arg0: i32) -> (i32, i32) {
    %c0_i32 = arith.constant 0 : i32
    %c0_i32_0 = arith.constant 0 : i32
    %c0_i32_1 = arith.constant 0 : i32
    return %c0_i32, %c0_i32_0 : i32, i32
  }
  func.func @transform_6(%arg0: i32) -> (i32, i32) {
    %c0_i32 = arith.constant 0 : i32
    %c0_i32_0 = arith.constant 0 : i32
    %c0_i32_1 = arith.constant 0 : i32
    return %c0_i32, %c0_i32_0 : i32, i32
  }
  func.func @transform_7(%arg0: i32) -> (i32, i32) {
    %c0_i32 = arith.constant 0 : i32
    %c0_i32_0 = arith.constant 0 : i32
    %c0_i32_1 = arith.constant 0 : i32
    return %c0_i32, %c0_i32_0 : i32, i32
  }
  func.func @transform_8(%arg0: i32) -> (i32, i32) {
    %c0_i32 = arith.constant 0 : i32
    %c0_i32_0 = arith.constant 0 : i32
    %c0_i32_1 = arith.constant 0 : i32
    return %c0_i32, %c0_i32_0 : i32, i32
  }
  func.func @transform_9(%arg0: i32) -> (i32, i32) {
    %c0_i32 = arith.constant 0 : i32
    %c0_i32_0 = arith.constant 0 : i32
    %c0_i32_1 = arith.constant 0 : i32
    return %c0_i32, %c0_i32_0 : i32, i32
  }
  func.func @transform_10(%arg0: i32) -> (i32, i32, i32) {
    %c0_i32 = arith.constant 0 : i32
    %c0_i32_0 = arith.constant 0 : i32
    %c0_i32_1 = arith.constant 0 : i32
    return %arg0, %c0_i32, %c0_i32_0 : i32, i32, i32
  }
}

</mosaic_0001>

<bundles_post_ra>
// kernel: tpu_custom_call.1
= control target key start
LH: loop header
LB: loop body
LE: loop exit
PB: predicated region body
PF: predicated region fallthrough
CT: control target
= control target key end

     0   :  { %s4099_s0 = inlined_call_operand.hbm [shape: bf16[8,32,128], index: 0, kind: input, shape index: {}]   ;;  %s4100_s1 = inlined_call_operand.hbm [shape: bf16[8,32,132], index: 1, kind: input, shape index: {}]   ;;  %s4101_s2 = inlined_call_operand.hbm [shape: bf16[8,32,128], index: 2, kind: input, shape index: {}]   ;;  %s4102_s3 = inlined_call_operand.hbm [shape: f32[8,1,32], index: 3, kind: input, shape index: {}]   ;;  %s4103_s4 = inlined_call_operand.hbm [shape: bf16[128,128], index: 4, kind: input, shape index: {}]   ;;  %s4104_s5 = inlined_call_operand.hbm [shape: bf16[132,128], index: 5, kind: input, shape index: {}]   ;;  %s4105_s6 = inlined_call_operand.hbm [shape: bf16[128,128], index: 6, kind: input, shape index: {}]   ;;  %s4106_s7 = inlined_call_operand.vmem [shape: f32[3,128], index: 7, kind: input, shape index: {}]   ;;  %s4107_s8 = inlined_call_operand.hbm [shape: bf16[128,128], index: 8, kind: input, shape index: {}]   ;;  %s4108_s9 = inlined_call_operand.vmem [shape: f32[1,128], index: 9, kind: input, shape index: {}]   ;;  %s4109_s10 = inlined_call_operand.hbm [shape: f32[8,32,128], index: 10, kind: output, shape index: {}]  }
   0x1   :  { %4129 = sst [smem:[#allocation29_spill]] %s4100_s1 }
   0x2   :  { %4130 = sst [smem:[#allocation30_spill]] %s4103_s4 }
   0x3   :  { %4131 = sst [smem:[#allocation31_spill]] %s4104_s5 }
   0x4   :  { %4132 = sst [smem:[#allocation32_spill]] %s4105_s6 }
   0x5   :  { %4133 = sst [smem:[#allocation33_spill]] %s4107_s8 }
   0x6   :  { %4134 = sst [smem:[#allocation34_spill]] %s4109_s10 }
   0x7   :  { %15 = vsyncpa [#allocation3], 0 }
   0x8   :  { %17 = vsyncpa [#allocation3 + $0x1], 0 }
   0x9   :  { %18 = vsyncpa [#allocation6], 0 }
   0xa   :  { %20 = vsyncpa [#allocation6 + $0x1], 0 }
   0xb   :  { %21 = vsyncpa [#allocation9], 0 }
   0xc   :  { %23 = vsyncpa [#allocation9 + $0x1], 0 }
   0xd   :  { %24 = vsyncpa [#allocation12], 0 }
   0xe   :  { %25 = vsyncpa [#allocation15], 0 }
   0xf   :  { %26 = vsyncpa [#allocation4], 0 }
  0x10   :  { %28 = vsyncpa [#allocation4 + $0x1], 0  ;;  %s3356_s13 = smov 0   ;;  %s3358_s14 = smov 0  }
  0x11   :  { %s3360_s15 = smov 0   ;;  %s3362_s16 = smov 0  }
  0x12 LB: > { %4135 = sst [smem:[#allocation24_spill]] %s3269_s13  ;;  %s3377_s17 = sadd.s32 4294967295, %s3281_s16   ;;  %s3281_s16 = sphi %s3362_s16, %s4173_s16   ;;  %s3277_s15 = sphi %s3360_s15, %s4175_s15   ;;  %s3273_s14 = sphi %s3358_s14, %s4177_s14   ;;  %s3269_s13 = sphi %s3356_s13, %s4176_s13  }
  0x13   : > { %4136 = sst [smem:[#allocation25_spill]] %s3277_s15  ;;  %s2364_s18 = sadd.s32 4294967294, %s3281_s16  }
  0x14   : > { %p54_p0 = scmp.ne.s32.totalorder %s3273_s14, %s3269_s13  ;;  %p4117_p1 = scmp.eq.s32.totalorder %s3377_s17, 0 }
  0x15   : > { %p282_p2 = scmp.eq.s32.totalorder %s3377_s17, 1  ;;  %p288_p3 = scmp.eq.s32.totalorder %s2364_s18, 1 }
  0x16   : > { %p3386_p4 = por %p4117_p1, %p54_p0  ;;  %p2365_p5 = scmp.ge.s32.totalorder %s3281_s16, 1 }
  0x17   : > { %p3391_p6 = por %p288_p3, %p54_p0  ;;  %p295_p7 = scmp.lt.s32.totalorder %s3281_s16, 3 }
  0x18   : > { %s4137_s19 = scalar_select %p3386_p4, 1, 0 }
  0x19   : > { %s4138_s20 = scalar_select %p3391_p6, 1, 0 }
  0x1a   : > { %p3396_p8 = pnand %p2365_p5, %p295_p7  ;;  %s3283_s22 = smov [#allocation10]  }
  0x1b   : > { %4139 = sst [smem:[#allocation26_spill]] %s4138_s20  ;;  %s307_s23 = sshll.u32 %s3283_s22, 4  ;;  %s308_s23 = int_to_ptr.vmem [resolvable:$true] %s307_s23 }
  0x1c   : > { %s4140_s21 = scalar_select %p3396_p8, 1, 0 }
  0x1d   : > { %p2759_p9 = pneg %p3396_p8  ;;  %s3284_s25 = smov [#allocation11]  }
  0x1e   : > { %s320_s26 = sshll.u32 %s3284_s25, 4  ;;  %s2992_s27 = scalar_lea.vmem %s308_s23, 1024  ;;  %s321_s26 = int_to_ptr.vmem [resolvable:$true] %s320_s26 }
  0x1f   : > { %p3405_p11 = pnand %p2759_p9, %p4117_p1  ;;  %p2993_p13 = scmp.ne.s32.totalorder %s308_s23, %s2992_s27 }
  0x20   : > { %p3000_p5 = scmp.lt.s32.totalorder %s308_s23, %s308_s23  ;;  %p3001_p7 = scmp.lt.s32.totalorder %s2992_s27, %s2992_s27 }
  0x21   : > { %s4141_s24 = scalar_select %p3405_p11, 1, 0 }
  0x22   : > { %p4118_p12 = pneg %p3405_p11  ;;  %p3002_p10 = por %p3001_p7, %p3000_p5 }
  0x24   : > { %p2995_p0 = pnand %p2993_p13, %p4118_p12 }
  0x26   : > { %p2996_p3 = pneg %p2995_p0 }
  0x28   : > { %p3003_p9 = pnand %p3002_p10, %p2996_p3 }
  0x2a   : > { %3006 = shalt.err (!%p3003_p9)
}
  0x2b   : > { %s4110_s28 = smov 64   ;;  %s4112_s29 = smov 4  }
  0x2c   : > { %s4142_s4 = sld [smem:[#allocation30_spill]]  ;;  %s3018_s12 = scalar_lea.vmem %s321_s26, 1088 }
  0x2d   : > { %p3019_p13 = scmp.ne.s32.totalorder %s321_s26, %s3018_s12  ;;  %p3026_p10 = scmp.lt.s32.totalorder %s321_s26, %s321_s26 }
  0x2e   : > { %p3027_p3 = scmp.lt.s32.totalorder %s3018_s12, %s3018_s12 }
  0x2f   : > { %p3021_p0 = pnand %p3019_p13, %p4118_p12 }
  0x30   : > { %p3028_p7 = por %p3027_p3, %p3026_p10 }
  0x31   : > { %p3022_p5 = pneg %p3021_p0 }
  0x32   : > { %2762 = dma.hbm_to_vmem [thread:$0]  (!%p3405_p11), %s4142_s4, 1024, %s308_s23, [#allocation9], %s4110_s28, %s4110_s28, %s4112_s29  }
  0x33   : > { %p3029_p9 = pnand %p3028_p7, %p3022_p5 }
  0x35   : > { %3032 = shalt.err (!%p3029_p9)
}
  0x36   : > { %s4143_s5 = sld [smem:[#allocation31_spill]]  ;;  %s3434_s23 = sadd.s32 1, %s3281_s16  }
  0x37   : > { %4144 = sst [smem:[#allocation27_spill]] %s3434_s23  ;;  %s41_s25 = sadd.s32 1, %s3277_s15 }
  0x38   : > { %s38_s27 = ssub.s32 %s3281_s16, %s3434_s23  ;;  %p48_p13 = scmp.ne.s32.totalorder %s3277_s15, %s3273_s14 }
  0x39   : > { %p39_p0 = scmp.eq.s32.totalorder %s38_s27, 0  ;;  %p49_p5 = scmp.eq.s32.totalorder %s3281_s16, 0 }
  0x3a   : > { %p3444_p10 = por %p282_p2, %p48_p13  ;;  %p2793_p3 = scmp.lt.s32.totalorder %s3281_s16, 2 }
  0x3b   : > { %s3450_s11 = scalar_select %p39_p0, %s3277_s15, %s41_s25  }
  0x3c   : > { %2765 = dma.hbm_to_vmem [thread:$0]  (!%p3405_p11), %s4143_s5, 1088, %s321_s26, [#allocation12], %s4110_s28, %s4110_s28, %s4112_s29  }
  0x3d   : > { %s4145_s30 = scalar_select %p3444_p10, 1, 0 }
  0x3e   : > { %4146 = sst [smem:[#allocation28_spill]] %s3450_s11  ;;  %p50_p7 = por %p49_p5, %p48_p13 }
  0x3f   : > { %s3453_s12 = sand.u32 1, %s3277_s15   ;;  %s4119_s26 = sand.u32 1, %s3281_s16  }
  0x40   : > { %s2375_s18 = sshll.u32 %s3453_s12, 7  ;;  %p3457_p9 = pnand %p2793_p3, %p50_p7 }
  0x41   : > { %s2487_s27 = sshll.u32 %s3281_s16, 11  ;;  %s4148_s1 = sld [smem:[#allocation29_spill]] }
  0x42   : > { %s392_s25 = scalar_lea.vmem [#allocation5], %s2375_s18  ;;  %s3471_s11 = scalar_lea.sflag [#allocation6], %s4119_s26 }
  0x43   : > { %s400_s5 = sshll.u32 %s392_s25, 4  ;;  %p3477_p13 = pneg %p3457_p9  ;;  %s3467_s5 = int_to_ptr.vmem [resolvable:$true] %s400_s5 }
  0x47   : > { %s3465_s4 = scalar_lea.hbm %s4148_s1, %s2487_s27  ;;  %s3038_s18 = scalar_lea.hbm %s4148_s1, 4096 }
  0x48   : > { %s3033_s15 = scalar_lea.hbm %s3465_s4, 2048  ;;  %p3039_p3 = scmp.lt.s32.totalorder %s3465_s4, %s4148_s1 }
  0x49   : > { %p3034_p2 = scmp.ne.s32.totalorder %s3465_s4, %s3033_s15  ;;  %p3040_p7 = scmp.lt.s32.totalorder %s3038_s18, %s3033_s15 }
  0x4b   : > { %p3036_p0 = pnand %p3477_p13, %p3034_p2  ;;  %p3041_p1 = por %p3040_p7, %p3039_p3 }
  0x4d   : > { %p3037_p5 = pneg %p3036_p0 }
  0x4f   : > { %p3042_p12 = pnand %p3041_p1, %p3037_p5 }
  0x51   : > { %3045 = shalt.err (!%p3042_p12)
}
  0x52   : > { %s3046_s26 = scalar_lea.vmem %s3467_s5, 2048  ;;  %s3287_s20 = smov [#allocation5]  }
  0x53   : > { %p3047_p6 = scmp.ne.s32.totalorder %s3467_s5, %s3046_s26  ;;  %s3051_s28 = sshll.u32 %s3287_s20, 4  ;;  %s3052_s28 = int_to_ptr.vmem [resolvable:$false] %s3051_s28 }
  0x54   : > { %s3053_s29 = scalar_lea.vmem %s3052_s28, 4096  ;;  %p3054_p10 = scmp.lt.s32.totalorder %s3467_s5, %s3052_s28 }
  0x55   : > { %p3049_p2 = pnand %p3047_p6, %p3477_p13  ;;  %p3055_p4 = scmp.lt.s32.totalorder %s3053_s29, %s3046_s26 }
  0x57   : > { %p3050_p0 = pneg %p3049_p2  ;;  %p3056_p8 = por %p3055_p4, %p3054_p10 }
  0x59   : > { %p3057_p11 = pnand %p3056_p8, %p3050_p0 }
  0x5b   : > { %3060 = shalt.err (!%p3057_p11)
}
  0x5c   : > { %s3288_s15 = smov 128   ;;  %s3289_s18 = smov 8  }
  0x5d   : > { %2778 = dma.hbm_to_vmem [thread:$0]  (!%p3457_p9), %s3465_s4, 2048, %s3467_s5, %s3471_s11, %s3288_s15, %s3288_s15, %s3289_s18  }
  0x5e   : > { %s3290_s27 = smov [#allocation13]   ;;  %s3291_s20 = smov [#allocation14]  }
  0x5f   : > { %s333_s25 = sshll.u32 %s3290_s27, 4  ;;  %s349_s1 = sshll.u32 %s3291_s20, 4  ;;  %s334_s25 = int_to_ptr.vmem [resolvable:$true] %s333_s25  ;;  %s350_s1 = int_to_ptr.vmem [resolvable:$true] %s349_s1 }
  0x60   : > { %s3072_s13 = scalar_lea.vmem %s334_s25, 1024  ;;  %p4150_p6 = scmp.ne.s32.totalorder %s4141_s24, 0 }
  0x61   : > { %p3073_p1 = scmp.ne.s32.totalorder %s334_s25, %s3072_s13  ;;  %p3080_p12 = scmp.lt.s32.totalorder %s334_s25, %s334_s25 }
  0x62   : > { %p4151_p4 = pneg %p4150_p6  ;;  %p3081_p10 = scmp.lt.s32.totalorder %s3072_s13, %s3072_s13 }
  0x64   : > { %p3075_p8 = pnand %p3073_p1, %p4151_p4  ;;  %p3082_p5 = por %p3081_p10, %p3080_p12 }
  0x66   : > { %p3076_p11 = pneg %p3075_p8 }
  0x68   : > { %p3083_p3 = pnand %p3082_p5, %p3076_p11 }
  0x6a   : > { %3086 = shalt.err (!%p3083_p3)
}
  0x6b   : > { %s4152_s26 = smov 4   ;;  %s4153_s4 = smov 64  }
  0x6c   : > { %s4154_s6 = sld [smem:[#allocation32_spill]]  ;;  %s3098_s29 = scalar_lea.vmem %s350_s1, 1024 }
  0x6d   : > { %p3099_p7 = scmp.ne.s32.totalorder %s350_s1, %s3098_s29  ;;  %p4155_p2 = pmov %p4151_p4 }
  0x6e   : > { %p3106_p4 = scmp.lt.s32.totalorder %s350_s1, %s350_s1  ;;  %p3107_p8 = scmp.lt.s32.totalorder %s3098_s29, %s3098_s29 }
  0x6f   : > { %p3101_p0 = pnand %p3099_p7, %p4155_p2 }
  0x70   : > { %p3108_p11 = por %p3107_p8, %p3106_p4 }
  0x71   : > { %p3102_p1 = pneg %p3101_p0 }
  0x72   : > { %2768 = dma.hbm_to_vmem [thread:$0]  (!%p4150_p6), %s4154_s6, 1024, %s334_s25, [#allocation12], %s4153_s4, %s4153_s4, %s4152_s26  }
  0x73   : > { %p3109_p12 = pnand %p3108_p11, %p3102_p1 }
  0x75   : > { %3112 = shalt.err (!%p3109_p12)
}
  0x76   : > { %s4156_s8 = sld [smem:[#allocation33_spill]]  ;;  %s4128_s18 = sshll.u32 %s3453_s12, 6 }
  0x77   : > { %s2485_s27 = sshll.u32 %s3281_s16, 10  ;;  %s370_s24 = scalar_lea.vmem [#allocation2], %s4128_s18 }
  0x78   : > { %s3527_s5 = scalar_lea.hbm %s4099_s0, %s2485_s27  ;;  %s378_s28 = sshll.u32 %s370_s24, 4  ;;  %s3531_s28 = int_to_ptr.vmem [resolvable:$true] %s378_s28 }
  0x79   : > { %s3536_s15 = scalar_lea.hbm %s4101_s2, %s2485_s27  ;;  %s3113_s6 = scalar_lea.hbm %s3527_s5, 1024 }
  0x7a   : > { %p3119_p3 = scmp.lt.s32.totalorder %s3527_s5, %s4099_s0 }
  0x7c   : > { %2771 = dma.hbm_to_vmem [thread:$0]  (!%p4150_p6), %s4156_s8, 1024, %s350_s1, [#allocation15], %s4153_s4, %s4153_s4, %s4152_s26  }
  0x7d   : > { %s367_s1 = scalar_lea.sflag [#allocation3], %s3453_s12  ;;  %p3114_p6 = scmp.ne.s32.totalorder %s3527_s5, %s3113_s6 }
  0x7e   : > { %s3118_s8 = scalar_lea.hbm %s4099_s0, 2048 }
  0x7f   : > { %p3116_p10 = pnand %p3114_p6, %p3477_p13  ;;  %p3120_p7 = scmp.lt.s32.totalorder %s3118_s8, %s3113_s6 }
  0x81   : > { %p3117_p5 = pneg %p3116_p10  ;;  %p3121_p2 = por %p3120_p7, %p3119_p3 }
  0x83   : > { %p3122_p0 = pnand %p3121_p2, %p3117_p5 }
  0x85   : > { %3125 = shalt.err (!%p3122_p0)
}
  0x86   : > { %s3126_s27 = scalar_lea.vmem %s3531_s28, 1024  ;;  %s3292_s24 = smov [#allocation2]  }
  0x87   : > { %p3127_p1 = scmp.ne.s32.totalorder %s3531_s28, %s3126_s27  ;;  %s3131_s29 = sshll.u32 %s3292_s24, 4  ;;  %s3132_s29 = int_to_ptr.vmem [resolvable:$false] %s3131_s29 }
  0x88   : > { %s3133_s13 = scalar_lea.vmem %s3132_s29, 2048  ;;  %p3134_p11 = scmp.lt.s32.totalorder %s3531_s28, %s3132_s29 }
  0x89   : > { %p3129_p4 = pnand %p3127_p1, %p3477_p13  ;;  %p3135_p12 = scmp.lt.s32.totalorder %s3133_s13, %s3126_s27 }
  0x8b   : > { %p3130_p8 = pneg %p3129_p4  ;;  %p3136_p6 = por %p3135_p12, %p3134_p11 }
  0x8d   : > { %p3137_p10 = pnand %p3136_p6, %p3130_p8 }
  0x8f   : > { %3140 = shalt.err (!%p3137_p10)
}
  0x90   : > { %2775 = dma.hbm_to_vmem [thread:$0]  (!%p3457_p9), %s3527_s5, 1024, %s3531_s28, %s367_s1, %s4153_s4, %s4153_s4, %s4152_s26  }
  0x91   : > { %s4157_s6 = sshll.u32 %s3453_s12, 6  ;;  %s2383_s18 = sshll.u32 %s3453_s12, 2 }
  0x92   : > { %s414_s8 = scalar_lea.vmem [#allocation7], %s4157_s6  ;;  %s3141_s25 = scalar_lea.hbm %s3536_s15, 1024 }
  0x93   : > { %s422_s10 = sshll.u32 %s414_s8, 4  ;;  %p3142_p5 = scmp.ne.s32.totalorder %s3536_s15, %s3141_s25  ;;  %s423_s10 = int_to_ptr.vmem [resolvable:$true] %s422_s10 }
  0x94   : > { %s3146_s24 = scalar_lea.hbm %s4101_s2, 2048  ;;  %p3147_p2 = scmp.lt.s32.totalorder %s3536_s15, %s4101_s2 }
  0x95   : > { %p3144_p3 = pnand %p3142_p5, %p3477_p13  ;;  %p3148_p0 = scmp.lt.s32.totalorder %s3146_s24, %s3141_s25 }
  0x97   : > { %p3145_p7 = pneg %p3144_p3  ;;  %p3149_p1 = por %p3148_p0, %p3147_p2 }
  0x99   : > { %p3150_p4 = pnand %p3149_p1, %p3145_p7 }
  0x9b   : > { %3153 = shalt.err (!%p3150_p4)
}
  0x9c   : > { %s3154_s5 = scalar_lea.vmem %s423_s10, 1024  ;;  %s3293_s28 = smov [#allocation7]  }
  0x9d   : > { %p3155_p8 = scmp.ne.s32.totalorder %s423_s10, %s3154_s5  ;;  %s3159_s1 = sshll.u32 %s3293_s28, 4  ;;  %s3160_s1 = int_to_ptr.vmem [resolvable:$false] %s3159_s1 }
  0x9e   : > { %s3161_s6 = scalar_lea.vmem %s3160_s1, 2048  ;;  %p3162_p6 = scmp.lt.s32.totalorder %s423_s10, %s3160_s1 }
  0x9f   : > { %p3157_p11 = pnand %p3155_p8, %p3477_p13  ;;  %p3163_p10 = scmp.lt.s32.totalorder %s3161_s6, %s3154_s5 }
  0xa1   : > { %p3158_p12 = pneg %p3157_p11  ;;  %p3164_p5 = por %p3163_p10, %p3162_p6 }
  0xa3   : > { %p3165_p3 = pnand %p3164_p5, %p3158_p12 }
  0xa5   : > { %3168 = shalt.err (!%p3165_p3)
}
  0xa6   : > { %2781 = dma.hbm_to_vmem [thread:$0]  (!%p3457_p9), %s3536_s15, 1024, %s423_s10, %s3471_s11, %s4153_s4, %s4153_s4, %s4152_s26  }
  0xa7   : > { %s2490_s8 = sshll.u32 %s3281_s16, 6  ;;  %s436_s25 = scalar_lea.vmem [#allocation8], %s2383_s18 }
  0xa8   : > { %s443_s20 = sshll.u32 %s436_s25, 4  ;;  %s3591_s29 = scalar_lea.hbm %s4102_s3, %s2490_s8  ;;  %s3593_s20 = int_to_ptr.vmem [resolvable:$true] %s443_s20 }
  0xa9   : > { %s4158_s13 = sand.u32 1, %s3281_s16   ;;  %s3169_s28 = scalar_lea.hbm %s3591_s29, 64 }
  0xaa   : > { %s3597_s5 = scalar_lea.sflag [#allocation9], %s4158_s13  ;;  %p3170_p7 = scmp.ne.s32.totalorder %s3591_s29, %s3169_s28 }
  0xab   : > { %s3174_s26 = scalar_lea.hbm %s4102_s3, 128  ;;  %p3175_p1 = scmp.lt.s32.totalorder %s3591_s29, %s4102_s3 }
  0xac   : > { %p3172_p2 = pnand %p3170_p7, %p3477_p13  ;;  %p3176_p4 = scmp.lt.s32.totalorder %s3174_s26, %s3169_s28 }
  0xae   : > { %p3173_p0 = pneg %p3172_p2  ;;  %p3177_p8 = por %p3176_p4, %p3175_p1 }
  0xb0   : > { %p3178_p11 = pnand %p3177_p8, %p3173_p0 }
  0xb2   : > { %3181 = shalt.err (!%p3178_p11)
}
  0xb3   : > { %s3182_s10 = scalar_lea.vmem %s3593_s20, 64  ;;  %s3294_s18 = smov [#allocation8]  }
  0xb4   : > { %p3183_p12 = scmp.ne.s32.totalorder %s3593_s20, %s3182_s10  ;;  %s3187_s1 = sshll.u32 %s3294_s18, 4  ;;  %s3188_s1 = int_to_ptr.vmem [resolvable:$false] %s3187_s1 }
  0xb5   : > { %s3189_s6 = scalar_lea.vmem %s3188_s1, 128  ;;  %p3190_p5 = scmp.lt.s32.totalorder %s3593_s20, %s3188_s1 }
  0xb6   : > { %p3185_p6 = pnand %p3183_p12, %p3477_p13  ;;  %p3191_p3 = scmp.lt.s32.totalorder %s3189_s6, %s3182_s10 }
  0xb8   : > { %p3186_p10 = pneg %p3185_p6  ;;  %p3192_p7 = por %p3191_p3, %p3190_p5 }
  0xba   : > { %p3193_p2 = pnand %p3192_p7, %p3186_p10 }
  0xbc   : > { %3196 = shalt.err (!%p3193_p2)
}
  0xbd   : > { %s3295_s8 = smov 16   ;;  %s3296_s25 = smov 1  }
  0xbe   : > { %2784 = dma.hbm_to_vmem [thread:$0]  (!%p3457_p9), %s3591_s29, 64, %s3593_s20, %s3597_s5, %s3295_s8, %s3295_s8, %s3296_s25  }
  0xbf   : > { %p4159_p13 = scmp.ne.s32.totalorder %s4140_s21, 0 }
  0xc0   : > { %s3623_s23 = sand.u32 (!%p4159_p13), 1, %s3273_s14   ;;  %p4160_p0 = scmp.ne.s32.totalorder (!%p4159_p13), %s4137_s19, 0 }
  0xc1   : > { %455 = sbr.rel (%p4159_p13) target bundleno = 1493 (0x5d5), region = 60  ;;  %s2387_s27 = sshll.u32 (!%p4159_p13), %s3623_s23, 6 }
  0xc2   : > { %s458_s24 = scalar_lea.sflag (!%p4159_p13), [#allocation3], %s3623_s23  ;;  %s3627_s13 = scalar_lea.vmem (!%p4159_p13), [#allocation2], %s2387_s27 }
  0xc6   : > { %3240 = dma.done.wait (%p4160_p0), %s458_s24, 1024  }
  0xc7   : > { %3242 = vsyncadd (%p4160_p0), %s458_s24, 4294966272  ;;  %s466_s21 = sand.u32 1, %s3377_s17   ;;  %s2388_s22 = sshll.u32 %s3623_s23, 7 }
  0xc8   : > { %s467_s20 = scalar_lea.sflag [#allocation6], %s466_s21  ;;  %s3637_s29 = scalar_lea.vmem [#allocation5], %s2388_s22 }
  0xc9   : > { %3244 = dma.done.wait (%p4160_p0), %s467_s20, 3072  }
  0xca   : > { %3246 = vsyncadd (%p4160_p0), %s467_s20, 4294964224  ;;  %s2390_s5 = sshll.u32 %s3623_s23, 2  ;;  %s3644_s28 = scalar_lea.vmem [#allocation7], %s2387_s27 }
  0xcb   : > { %s485_s11 = scalar_lea.sflag [#allocation9], %s466_s21  ;;  %s3646_s12 = scalar_lea.vmem [#allocation8], %s2390_s5 }
  0xcc   : > { %3248 = dma.done.wait (%p4160_p0), %s485_s11, 64  }
  0xcd   : > { %3250 = vsyncadd (%p4160_p0), %s485_s11, 4294967232  ;;  %p4161_p9 = scmp.eq.s32.totalorder %s3377_s17, 0 }
  0xcf   : > { %3252 = dma.done.wait (%p4161_p9), [#allocation9], 1024   ;;  %p4162_p1 = pmov %p4161_p9 }
  0xd1   : > { %3254 = vsyncadd (%p4162_p1), [#allocation9], 4294966272  ;;  %p4163_p4 = pmov %p4162_p1 }
  0xd2   : > { %p4164_p8 = pmov %p4162_p1 }
  0xd3   : > { %3256 = dma.done.wait (%p4163_p4), [#allocation12], 2112  }
  0xd4   : > { %3258 = vsyncadd (%p4164_p8), [#allocation12], 4294965184  ;;  %p4165_p11 = pmov %p4162_p1 }
  0xd5   : > { %p4166_p12 = pmov %p4162_p1 }
  0xd6   : > { %3260 = dma.done.wait (%p4165_p11), [#allocation15], 1024  }
  0xd7   : > { %3262 = vsyncadd (%p4166_p12), [#allocation15], 4294966272  ;;  %v2844_v0 = vld [vmem:[#allocation10 + $0x38] sm:$0xff]   ;;  %v2845_v1 = vld [vmem:[#allocation10 + $0x30] sm:$0xff]   ;;  %v3297_v12 = vmov 0   ;;  %vm968_vm0 = vcmask 31744   ;;  %v627_v59 = vlaneseq }
  0xd8   : > { %2573 = vmatprep.subr.bf16.mxu1 %v2844_v0  ;;  %v2846_v2 = vld [vmem:[#allocation10 + $0x28] sm:$0xff]   ;;  %v2847_v3 = vld [vmem:[#allocation10 + $0x20] sm:$0xff]   ;;  %v2852_v4 = vld [vmem:[%s3627_s13] sm:$0xff]   ;;  %vm993_vm1 = vcmask 1041408   ;;  %vm1575_vm4 = vcmask 261120   ;;  %s4031_s10 = scalar_lea.vmem [#allocation16], %s2388_s22 }
  0xd9   : > { %2574 = vmatpush3.bf16.msra.mxu1 %v2844_v0  ;;  %2589 = vmatprep.mubr.bf16.mxu1 %v2852_v4  ;;  %v2848_v5 = vld [vmem:[#allocation10 + $0x18] sm:$0xff]   ;;  %v2849_v6 = vld [vmem:[#allocation10 + $0x10] sm:$0xff]   ;;  %v2850_v7 = vld [vmem:[#allocation10 + $0x8] sm:$0xff]   ;;  %v628_v60 = vshrl.u32 %v627_v59, 7  ;;  %s2492_s18 = sshll.u32 %s3377_s17, 11  ;;  %s2187_s1 = sshll.u32 %s4031_s10, 4  ;;  %s4054_s1 = int_to_ptr.vmem [resolvable:$true] %s2187_s1 }
  0xda   : > { %2575 = vmatprep.subr.bf16.mxu1 %v2845_v1  ;;  %v2851_v8 = vld [vmem:[#allocation10] sm:$0xff]   ;;  %v2854_v10 = vld [vmem:[#allocation11 + $0x38] sm:$0xff]   ;;  %v2856_v11 = vld [vmem:[%s3627_s13 + $0x10] sm:$0xff]   ;;  %s4167_s25 = sld [smem:[#allocation34_spill]]  ;;  %s2173_s24 = scalar_lea.sflag [#allocation4], %s3623_s23 }
  0xdb   : > { %v2853_v9 = vld [vmem:[%s3627_s13 + $0x8] sm:$0xff]   ;;  %v2855_v13 = vld [vmem:[#allocation11 + $0x30] sm:$0xff]   ;;  %v2858_v17 = vld [vmem:[#allocation11 + $0x28] sm:$0xff]   ;;  %v3713_v61 = vsub.s32 0, %v628_v60  ;;  %s3197_s17 = scalar_lea.vmem %s4054_s1, 2048  ;;  %p4168_p10 = scmp.ne.s32.totalorder %s4145_s30, 0 }
  0xdc   : > { %v2857_v14 = vld [vmem:[%s3627_s13 + $0x18] sm:$0xff]   ;;  %v2893_v15 = vld [vmem:[#allocation13 + $0x38] sm:$0xff]   ;;  %v2896_v23 = vld [vmem:[#allocation13 + $0x20] sm:$0xff]   ;;  %p3198_p6 = scmp.ne.s32.totalorder %s4054_s1, %s3197_s17 }
  0xdd   : > { %2576 = vmatpush3.bf16.msra.mxu1 %v2845_v1  ;;  %v2894_v16 = vld [vmem:[#allocation13 + $0x30] sm:$0xff]   ;;  %2605 = vmatprep.subr.bf16.mxu0 %v2893_v15  ;;  %v2895_v19 = vld [vmem:[#allocation13 + $0x28] sm:$0xff]   ;;  %v2859_v20 = vld [vmem:[#allocation11 + $0x20] sm:$0xff]  }
  0xde   : > { %2577 = vmatprep.subr.bf16.mxu1 %v2846_v2  ;;  %v2860_v18 = vld [vmem:[%s3627_s13 + $0x20] sm:$0xff]   ;;  %2606 = vmatpush3.bf16.msra.mxu0 %v2893_v15  ;;  %v2861_v21 = vld [vmem:[%s3627_s13 + $0x28] sm:$0xff]   ;;  %v2864_v25 = vld [vmem:[%s3627_s13 + $0x30] sm:$0xff]   ;;  %p3199_p5 = pnand %p3198_p6, %p4168_p10 }
  0xdf   : > { %2607 = vmatprep.subr.bf16.mxu0 %v2894_v16  ;;  %v2901_v22 = vld [vmem:[%s3644_s28] sm:$0xff]   ;;  %v2863_v27 = vld [vmem:[#allocation11 + $0x10] sm:$0xff]   ;;  %v2866_v30 = vld [vmem:[#allocation11 + $0x8] sm:$0xff]  }
  0xe0   : > { %v2862_v24 = vld [vmem:[#allocation11 + $0x18] sm:$0xff]   ;;  %2621 = vmatprep.mubr.bf16.mxu0 %v2901_v22  ;;  %v2865_v29 = vld [vmem:[%s3627_s13 + $0x38] sm:$0xff]   ;;  %v2867_v33 = vld [vmem:[#allocation11] sm:$0xff]   ;;  %s4052_s27 = scalar_lea.hbm %s4167_s25, %s2492_s18  ;;  %p3200_p3 = pneg %p3199_p5 }
  0xe1   : > { %2578 = vmatpush3.bf16.msra.mxu1 %v2846_v2  ;;  %v2897_v26 = vld [vmem:[#allocation13 + $0x18] sm:$0xff]   ;;  %v2898_v28 = vld [vmem:[#allocation13 + $0x10] sm:$0xff]   ;;  %v2899_v32 = vld [vmem:[#allocation13 + $0x8] sm:$0xff]   ;;  %s3298_s13 = smov [#allocation16]  }
  0xe2   : > { %2579 = vmatprep.subr.bf16.mxu1 %v2847_v3  ;;  %2608 = vmatpush3.bf16.msra.mxu0 %v2894_v16  ;;  %v2871_v31 = vld [vmem:[%s3637_s29 + $0x4] ss:$8 sps:$4 sm:$0xff]   ;;  %v2868_v34 = vld [vmem:[#allocation11 + $0x40] ss:$0 sps:$4 sm:$0x33]   ;;  %v2903_v40 = vld [vmem:[%s3644_s28 + $0x10] sm:$0xff]  }
  0xe3   : > { %2609 = vmatprep.subr.bf16.mxu0 %v2895_v19  ;;  %v2900_v35 = vld [vmem:[#allocation13] sm:$0xff]   ;;  %v995_v36 = vsel %vm993_vm1, %v2868_v34, 0  ;;  %v2869_v37 = vld [vmem:[%s3637_s29] ss:$8 sps:$4 sm:$0xff]   ;;  %v2872_v38 = vld [vmem:[%s3637_s29 + $0x14] ss:$8 sps:$4 sm:$0xff]  }
  0xe4   : > { %v2902_v39 = vld [vmem:[%s3644_s28 + $0x8] sm:$0xff]   ;;  %v2874_v41 = vld [vmem:[%s3637_s29 + $0x10] ss:$8 sps:$4 sm:$0xff]   ;;  %v2878_v45 = vld [vmem:[%s3637_s29 + $0x34] ss:$8 sps:$4 sm:$0xff]   ;;  %s3201_s21 = sshll.u32 %s3298_s13, 4  ;;  %s3202_s21 = int_to_ptr.vmem [resolvable:$false] %s3201_s21 }
  0xe5   : > { %2580 = vmatpush3.bf16.msra.mxu1 %v2847_v3  ;;  %v2875_v42 = vld [vmem:[%s3637_s29 + $0x24] ss:$8 sps:$4 sm:$0xff]   ;;  %v2904_v43 = vld [vmem:[%s3644_s28 + $0x18] sm:$0xff]   ;;  %v2877_v44 = vld [vmem:[%s3637_s29 + $0x20] ss:$8 sps:$4 sm:$0xff]   ;;  %s3203_s22 = scalar_lea.vmem %s3202_s21, 4096  ;;  %p3204_p7 = scmp.lt.s32.totalorder %s4054_s1, %s3202_s21 }
  0xe6   : > { %2581 = vmatprep.subr.bf16.mxu1 %v2848_v5  ;;  %2610 = vmatpush3.bf16.msra.mxu0 %v2895_v19  ;;  %v2880_v46 = vld [vmem:[%s3637_s29 + $0x30] ss:$8 sps:$4 sm:$0xff]   ;;  %v2881_v47 = vld [vmem:[%s3637_s29 + $0x44] ss:$8 sps:$4 sm:$0xff]   ;;  %v2883_v49 = vld [vmem:[%s3637_s29 + $0x40] ss:$8 sps:$4 sm:$0xff]   ;;  %p3205_p2 = scmp.lt.s32.totalorder %s3203_s22, %s3197_s17 }
  0xe7   : > { %2611 = vmatprep.subr.bf16.mxu0 %v2896_v23  ;;  %v2905_v48 = vld [vmem:[%s3644_s28 + $0x20] sm:$0xff]   ;;  %v2906_v50 = vld [vmem:[%s3644_s28 + $0x28] sm:$0xff]   ;;  %v2884_v51 = vld [vmem:[%s3637_s29 + $0x54] ss:$8 sps:$4 sm:$0xff]  }
  0xe8   : > { %v2907_v52 = vld [vmem:[%s3644_s28 + $0x30] sm:$0xff]   ;;  %v2908_v54 = vld [vmem:[%s3644_s28 + $0x38] sm:$0xff]   ;;  %v2887_v55 = vld [vmem:[%s3637_s29 + $0x64] ss:$8 sps:$4 sm:$0xff]   ;;  %p3206_p13 = por %p3205_p2, %p3204_p7 }
  0xe9   : > { %2582 = vmatpush3.bf16.msra.mxu1 %v2848_v5  ;;  %v2886_v53 = vld [vmem:[%s3637_s29 + $0x50] ss:$8 sps:$4 sm:$0xff]   ;;  %v2889_v56 = vld [vmem:[%s3637_s29 + $0x60] ss:$8 sps:$4 sm:$0xff]   ;;  %v2890_v57 = vld [vmem:[%s3637_s29 + $0x74] ss:$8 sps:$4 sm:$0xff]  }
  0xea   : > { %2583 = vmatprep.subr.bf16.mxu1 %v2849_v6  ;;  %2612 = vmatpush3.bf16.msra.mxu0 %v2896_v23  ;;  %v2892_v58 = vld [vmem:[%s3637_s29 + $0x70] ss:$8 sps:$4 sm:$0xff]   ;;  %v562_v62 = vld [vmem:[%s4106_s7] sm:$0x7]  ;;  %p3207_p0 = pnand %p3206_p13, %p3200_p3 }
  0xeb   : > { %2613 = vmatprep.subr.bf16.mxu0 %v2897_v26  ;;  %v3721_v1 = vrot.slane %v562_v62, %v3713_v61 }
  0xed   : > { %2584 = vmatpush3.bf16.msra.mxu1 %v2849_v6 }
  0xee   : > { %2585 = vmatprep.subr.bf16.mxu1 %v2850_v7  ;;  %2614 = vmatpush3.bf16.msra.mxu0 %v2897_v26 }
  0xef   : > { %2615 = vmatprep.subr.bf16.mxu0 %v2898_v28 }
  0xf1   : > { %2586 = vmatpush3.bf16.msra.mxu1 %v2850_v7 }
  0xf2   : > { %2587 = vmatprep.subr.bf16.mxu1 %v2851_v8  ;;  %2616 = vmatpush3.bf16.msra.mxu0 %v2898_v28 }
  0xf3   : > { %2617 = vmatprep.subr.bf16.mxu0 %v2899_v32 }
  0xf5   : > { %2588 = vmatpush3.bf16.msra.mxu1 %v2851_v8 }
  0xf6   : > { %997 = vmatprep.subr.bf16.mxu1 %v3297_v12  ;;  %2618 = vmatpush3.bf16.msra.mxu0 %v2899_v32 }
  0xf7   : > { %2619 = vmatprep.subr.bf16.mxu0 %v2900_v35 }
  0xf8   : > { %2590 = vmatmul.mubr.bf16.vlgmr.msra.gmra.mxu1 %v2853_v9 }
  0xf9   : > { %998 = vmatpush1.bf16.msra.mxu1 %v2854_v10  ;;  %2593 = vmatprep.mubr.bf16.mxu1 %v2856_v11 }
  0xfa   : > { %999 = vmatprep.subr.bf16.mxu1 %v3297_v12  ;;  %2620 = vmatpush3.bf16.msra.mxu0 %v2900_v35 }
  0xfd   : > { %1000 = vmatpush1.bf16.msra.mxu1 %v2855_v13  ;;  %2622 = vmatmul.mubr.bf16.vlgmr.msra.gmra.mxu0 %v2902_v39  ;;  %v1112_v39 = vsub.s32 2, %v628_v60 }
  0xfe   : > { %1001 = vmatprep.subr.bf16.mxu1 %v3297_v12  ;;  %2625 = vmatprep.mubr.bf16.mxu0 %v2903_v40  ;;  %v843_v40 = vsub.s32 1, %v628_v60 }
 0x100   : > { %2594 = vmatmul.mubr.bf16.gmra.mxu1 %v2857_v14 }
 0x101   : > { %1002 = vmatpush1.bf16.msra.mxu1 %v2858_v17  ;;  %2597 = vmatprep.mubr.bf16.mxu1 %v2860_v18 }
 0x102   : > { %1003 = vmatprep.subr.bf16.mxu1 %v3297_v12 }
 0x105   : > { %1004 = vmatpush1.bf16.msra.mxu1 %v2859_v20  ;;  %2626 = vmatmul.mubr.bf16.gmra.mxu0 %v2904_v43 }
 0x106   : > { %1005 = vmatprep.subr.bf16.mxu1 %v3297_v12  ;;  %2629 = vmatprep.mubr.bf16.mxu0 %v2905_v48 }
 0x108   : > { %2598 = vmatmul.mubr.bf16.gmra.mxu1 %v2861_v21 }
 0x109   : > { %1006 = vmatpush1.bf16.msra.mxu1 %v2862_v24  ;;  %2601 = vmatprep.mubr.bf16.mxu1 %v2864_v25 }
 0x10a   : > { %1007 = vmatprep.subr.bf16.mxu1 %v3297_v12 }
 0x10d   : > { %1008 = vmatpush1.bf16.msra.mxu1 %v2863_v27  ;;  %2630 = vmatmul.mubr.bf16.gmra.mxu0 %v2906_v50 }
 0x10e   : > { %1009 = vmatprep.subr.bf16.mxu1 %v3297_v12  ;;  %2633 = vmatprep.mubr.bf16.mxu0 %v2907_v52 }
 0x110   : > { %2602 = vmatmul.mubr.bf16.gmra.mxu1 %v2865_v29 }
 0x111   : > { %1010 = vmatpush1.bf16.msra.mxu1 %v2866_v30  ;;  %2437 = vmatprep.mubr.msk.bf16.mxu1 %vm968_vm0, %v2871_v31 }
 0x112   : > { %1011 = vmatprep.subr.bf16.mxu1 %v3297_v12 }
 0x115   : > { %1012 = vmatpush1.bf16.msra.mxu1 %v2867_v33  ;;  %2634 = vmatmul.mubr.bf16.gmra.mxu0 %v2908_v54 }
 0x116   : > { %1027 = vmatprep.subr.bf16.mxu1 %v3297_v12 }
 0x119   : > { %1028 = vmatpush2.bf16.msra.mxu1 %v995_v36 }
 0x11c   : > { %1030 = vmatmul.mubr.bf16.vlgmr.msra.gmra.mxu1 %v2869_v37 }
 0x11d   : > { %2438 = vmatprep.mubr.msk.bf16.mxu1 %vm968_vm0, %v2872_v38 }
 0x124   : > { %1038 = vmatmul.mubr.bf16.gmra.mxu1 %v2874_v41 }
 0x125   : > { %2439 = vmatprep.mubr.msk.bf16.mxu1 %vm968_vm0, %v2875_v42 }
 0x12c   : > { %1046 = vmatmul.mubr.bf16.gmra.mxu1 %v2877_v44 }
 0x12d   : > { %2440 = vmatprep.mubr.msk.bf16.mxu1 %vm968_vm0, %v2878_v45  ;;  %v3767_v45 = vrot.slane %v562_v62, %v1112_v39 }
 0x134   : > { %1054 = vmatmul.mubr.bf16.gmra.mxu1 %v2880_v46  ;;  %v3769_v46 = vrot.slane %v562_v62, %v843_v40 }
 0x135   : > { %2441 = vmatprep.mubr.msk.bf16.mxu1 %vm968_vm0, %v2881_v47 }
 0x13c   : > { %1062 = vmatmul.mubr.bf16.gmra.mxu1 %v2883_v49 }
 0x13d   : > { %2442 = vmatprep.mubr.msk.bf16.mxu1 %vm968_vm0, %v2884_v51 }
 0x144   : > { %1070 = vmatmul.mubr.bf16.gmra.mxu1 %v2886_v53 }
 0x145   : > { %2443 = vmatprep.mubr.msk.bf16.mxu1 %vm968_vm0, %v2887_v55 }
 0x14c   : > { %1078 = vmatmul.mubr.bf16.gmra.mxu1 %v2889_v56 }
 0x14d   : > { %2444 = vmatprep.mubr.msk.bf16.mxu1 %vm968_vm0, %v2890_v57 }
 0x154   : > { %1086 = vmatmul.mubr.bf16.gmra.mxu1 %v2892_v58 }
 0x1b8   : > { %v3718_v63 = vpop.f32.mrf.mxu1 }
 0x1ba   : > { %v761_v0 = vpop.f32.mrf.mxu1 }
 0x1bb   : > { %v762_v4 = vadd.f32 %v761_v0, %v3721_v1 }
 0x1bc   : > { %v3723_v2 = vpop.f32.mrf.mxu1 }
 0x1bd   : > { %v3757_v33 = vpop.f32.mrf.mxu0 }
 0x1be   : > { %v764_v3 = vpop.f32.mrf.mxu1 }
 0x1bf   : > { %v765_v5 = vadd.f32 %v764_v3, %v3721_v1  ;;  %v3759_v35 = vpop.f32.mrf.mxu0 }
 0x1c0   : > { %v2595_v6 = vpop.f32.mrf.mxu1 }
 0x1c1   : > { %v1307_v7 = vpack.c.bf16 %v765_v5, %v762_v4  ;;  %v3728_v8 = vadd.f32 %v2595_v6, %v3721_v1  ;;  %v3761_v37 = vpop.f32.mrf.mxu0 }
 0x1c2   : > { %v777_v9 = vpop.f32.mrf.mxu1 }
 0x1c3   : > { %2641 = vmatprep.mubr.bf16.mxu0 %v1307_v7  ;;  %v778_v14 = vadd.f32 %v777_v9, %v3721_v1  ;;  %v3763_v41 = vpop.f32.mrf.mxu0  ;;  %v773_v7 = vadd.f32 %v3723_v2, %v3721_v1 }
 0x1c4   : > { %v2596_v10 = vpop.f32.mrf.mxu1 }
 0x1c5   : > { %v3731_v11 = vadd.f32 %v2596_v10, %v3721_v1  ;;  %v3765_v43 = vpop.f32.mrf.mxu0 }
 0x1c6   : > { %v780_v13 = vpop.f32.mrf.mxu1 }
 0x1c7   : > { %v1310_v15 = vpack.c.bf16 %v3731_v11, %v3728_v8  ;;  %v781_v16 = vadd.f32 %v780_v13, %v3721_v1  ;;  %v1260_v47 = vpop.f32.mrf.mxu0  ;;  %v770_v13 = vadd.f32 %v3718_v63, %v3721_v1  ;;  %v1245_v8 = vadd.f32 %v3759_v35, %v3767_v45 }
 0x1c8   : > { %v2599_v17 = vpop.f32.mrf.mxu1  ;;  %v1261_v49 = vadd.f32 %v1260_v47, %v3767_v45  ;;  %v1248_v11 = vadd.f32 %v3763_v41, %v3767_v45  ;;  %v1269_v35 = vadd.f32 %v3765_v43, %v3767_v45 }
 0x1c9   : > { %v1309_v18 = vpack.c.bf16 %v781_v16, %v778_v14  ;;  %v3738_v19 = vadd.f32 %v2599_v17, %v3721_v1  ;;  %v3775_v53 = vpop.f32.mrf.mxu0 }
 0x1ca   : > { %v793_v20 = vpop.f32.mrf.mxu1  ;;  %v1272_v41 = vadd.f32 %v3775_v53, %v3767_v45 }
 0x1cb   : > { %2649 = vmatprep.mubr.bf16.mxu1 %v1309_v18  ;;  %v1263_v57 = vpop.f32.mrf.mxu0  ;;  %v794_v18 = vadd.f32 %v793_v20, %v3721_v1 }
 0x1cc   : > { %v2600_v21 = vpop.f32.mrf.mxu1  ;;  %v1264_v59 = vadd.f32 %v1263_v57, %v3767_v45 }
 0x1cd   : > { %v3741_v22 = vadd.f32 %v2600_v21, %v3721_v1 }
 0x1ce   : > { %v796_v23 = vpop.f32.mrf.mxu1  ;;  %v3779_v0 = vpack.c.bf16 %v1264_v59, %v1261_v49 }
 0x1cf   : > { %v1312_v24 = vpack.c.bf16 %v3741_v22, %v3738_v19  ;;  %v797_v9 = vadd.f32 %v796_v23, %v3721_v1 }
 0x1d0   : > { %v2603_v25 = vpop.f32.mrf.mxu1 }
 0x1d1   : > { %v3746_v26 = vadd.f32 %v2603_v25, %v3721_v1  ;;  %v2631_v25 = vpop.f32.mrf.mxu0 }
 0x1d2   : > { %v3748_v27 = vpop.f32.mrf.mxu1  ;;  %v1285_v23 = vadd.f32 %v2631_v25, %v3767_v45  ;;  %v1323_v25 = vpack.c.bf16 %v1248_v11, %v1245_v8 }
 0x1d4   : > { %v2604_v28 = vpop.f32.mrf.mxu1 }
 0x1d5   : > { %v3751_v29 = vadd.f32 %v2604_v28, %v3721_v1  ;;  %v1308_v28 = vpack.c.bf16 %v773_v7, %v770_v13 }
 0x1d6   : > { %v3755_v31 = vpop.f32.mrf.mxu1 }
 0x1d7   : > { %v1314_v30 = vpack.c.bf16 %v3751_v29, %v3746_v26 }
 0x1dc   : > { %v1031_v32 = vpop.f32.mrf.mxu1 }
 0x1dd   : > { %v1032_v55 = vadd.f32 %v1031_v32, %v3769_v46 }
 0x1de   : > { %v1033_v34 = vpop.f32.mrf.mxu1 }
 0x1df   : > { %v1311_v34 = vpack.c.bf16 %v797_v9, %v794_v18  ;;  %v1253_v9 = vadd.f32 %v3757_v33, %v3767_v45 }
 0x1e0   : > { %v1034_v36 = vpop.f32.mrf.mxu1 }
 0x1e1   : > { %v1035_v50 = vadd.f32 %v1034_v36, %v3769_v46 }
 0x1e2   : > { %v1036_v38 = vpop.f32.mrf.mxu1 }
 0x1e3   : > { %v1315_v60 = vpack.c.bf16 %v1035_v50, %v1032_v55  ;;  %v1276_v38 = vpop.f32.mrf.mxu0  ;;  %v813_v55 = vadd.f32 %v3755_v31, %v3721_v1 }
 0x1e4   : > { %v1039_v42 = vpop.f32.mrf.mxu1  ;;  %v1277_v39 = vadd.f32 %v1276_v38, %v3767_v45 }
 0x1e5   : > { %v1040_v51 = vadd.f32 %v1039_v42, %v3769_v46  ;;  %v2632_v20 = vpop.f32.mrf.mxu0 }
 0x1e6   : > { %v1041_v44 = vpop.f32.mrf.mxu1  ;;  %v1288_v42 = vadd.f32 %v2632_v20, %v3767_v45 }
 0x1e7   : > { %v1279_v47 = vpop.f32.mrf.mxu0 }
 0x1e8   : > { %v1042_v48 = vpop.f32.mrf.mxu1  ;;  %v1280_v49 = vadd.f32 %v1279_v47, %v3767_v45 }
 0x1e9   : > { %v1043_v52 = vadd.f32 %v1042_v48, %v3769_v46  ;;  %v3794_v48 = vpack.c.bf16 %v1288_v42, %v1285_v23 }
 0x1ea   : > { %v1044_v54 = vpop.f32.mrf.mxu1 }
 0x1eb   : > { %v1316_v56 = vpack.c.bf16 %v1043_v52, %v1040_v51  ;;  %v3797_v51 = vpack.c.bf16 %v1280_v49, %v1277_v39  ;;  %v1528_v49 = vld [vmem:[%s3646_s12 + $0x1] sm:$0x1] }
 0x1ec   : > { %v1047_v58 = vpop.f32.mrf.mxu1  ;;  %vm1532_vm5 = vcmp.gt.f32.partialorder %v1528_v49, 0.0 }
 0x1ed   : > { %2637 = vmatprep.subr.bf16.mxu0 %v1316_v56  ;;  %v1048_v32 = vadd.f32 %v1047_v58, %v3769_v46 }
 0x1ee   : > { %v1049_v62 = vpop.f32.mrf.mxu1  ;;  %2638 = vmatpush3.bf16.xpose.msra.mxu0 %v1316_v56 }
 0x1ef   : > { %2639 = vmatprep.subr.bf16.mxu0 %v1315_v60 }
 0x1f0   : > { %v1050_v3 = vpop.f32.mrf.mxu1 }
 0x1f1   : > { %v1051_v14 = vadd.f32 %v1050_v3, %v3769_v46 }
 0x1f2   : > { %v1052_v4 = vpop.f32.mrf.mxu1 }
 0x1f3   : > { %v1317_v63 = vpack.c.bf16 %v1051_v14, %v1048_v32 }
 0x1f4   : > { %v1055_v5 = vpop.f32.mrf.mxu1 }
 0x1f5   : > { %v1056_v16 = vadd.f32 %v1055_v5, %v3769_v46 }
 0x1f6   : > { %v1057_v6 = vpop.f32.mrf.mxu1  ;;  %2640 = vmatpush3.bf16.xpose.msra.mxu0 %v1315_v60  ;;  %v810_v60 = vadd.f32 %v3748_v27, %v3721_v1  ;;  %v1256_v1 = vadd.f32 %v3761_v37, %v3767_v45 }
 0x1f8   : > { %v1058_v10 = vpop.f32.mrf.mxu1  ;;  %v1313_v5 = vpack.c.bf16 %v813_v55, %v810_v60  ;;  %v1324_v13 = vpack.c.bf16 %v1256_v1, %v1253_v9 }
 0x1f9   : > { %v1059_v17 = vadd.f32 %v1058_v10, %v3769_v46 }
 0x1fa   : > { %v1060_v21 = vpop.f32.mrf.mxu1 }
 0x1fb   : > { %v1318_v2 = vpack.c.bf16 %v1059_v17, %v1056_v16 }
 0x1fc   : > { %v1063_v36 = vpop.f32.mrf.mxu1 }
 0x1fd   : > { %2642 = vmatmul.mubr.bf16.vlgmr.msra.gmra.mxu0 %v1308_v28  ;;  %2645 = vmatprep.subr.bf16.mxu1 %v1318_v2  ;;  %v1064_v3 = vadd.f32 %v1063_v36, %v3769_v46  ;;  %v3829_v36 = vpack.c.bf16 %v1272_v41, %v1269_v35 }
 0x1fe   : > { %v1065_v40 = vpop.f32.mrf.mxu1  ;;  %2646 = vmatpush3.bf16.xpose.msra.mxu1 %v1318_v2  ;;  %2657 = vmatprep.mubr.bf16.mxu0 %v1311_v34 }
 0x1ff   : > { %2647 = vmatprep.subr.bf16.mxu1 %v1317_v63 }
 0x200   : > { %v1066_v44 = vpop.f32.mrf.mxu1 }
 0x201   : > { %v1067_v57 = vadd.f32 %v1066_v44, %v3769_v46 }
 0x202   : > { %v1068_v50 = vpop.f32.mrf.mxu1 }
 0x203   : > { %v1319_v7 = vpack.c.bf16 %v1067_v57, %v1064_v3 }
 0x204   : > { %v1071_v52 = vpop.f32.mrf.mxu1 }
 0x205   : > { %v1072_v58 = vadd.f32 %v1071_v52, %v3769_v46 }
 0x206   : > { %v1073_v54 = vpop.f32.mrf.mxu1  ;;  %2648 = vmatpush3.bf16.xpose.msra.mxu1 %v1317_v63  ;;  %v1527_v63 = vld [vmem:[%s3646_s12] sm:$0x1] }
 0x207   : > { %vm1531_vm2 = vcmp.gt.f32.partialorder %v1527_v63, 0.0 }
 0x208   : > { %v1074_v56 = vpop.f32.mrf.mxu1  ;;  %v1535_v39 = vsel %vm1531_vm2, 1, %v3297_v12 }
 0x209   : > { %v1075_v59 = vadd.f32 %v1074_v56, %v3769_v46  ;;  %v1542_v40 = vrot.slane %v1535_v39, %v3713_v61  ;;  %v1536_v56 = vsel %vm1532_vm5, 1, %v3297_v12 }
 0x20a   : > { %v1076_v62 = vpop.f32.mrf.mxu1  ;;  %v1546_v57 = vrot.slane %v1536_v56, %v3713_v61 }
 0x20b   : > { %v1320_v4 = vpack.c.bf16 %v1075_v59, %v1072_v58  ;;  %vm1555_vm3 = vcmp.eq.s32.totalorder %v1542_v40, 1 }
 0x20c   : > { %v1079_v6 = vpop.f32.mrf.mxu1  ;;  %vm1556_vm6 = vcmp.eq.s32.totalorder %v1546_v57, 1 }
 0x20d   : > { %2650 = vmatmul.mubr.bf16.vlgmr.msra.gmra.mxu1 %v1310_v15  ;;  %2653 = vmatprep.subr.bf16.mxu0 %v1320_v4  ;;  %v2635_v15 = vpop.f32.mrf.mxu0  ;;  %v1080_v32 = vadd.f32 %v1079_v6, %v3769_v46 }
 0x20e   : > { %v1081_v31 = vpop.f32.mrf.mxu1  ;;  %2654 = vmatpush3.bf16.xpose.msra.mxu0 %v1320_v4  ;;  %2665 = vmatprep.mubr.bf16.mxu1 %v1313_v5  ;;  %v1529_v5 = vld [vmem:[%s3646_s12 + $0x2] sm:$0x1] }
 0x20f   : > { %2655 = vmatprep.subr.bf16.mxu0 %v1319_v7  ;;  %v1292_v28 = vpop.f32.mrf.mxu0  ;;  %vm1533_vm7 = vcmp.gt.f32.partialorder %v1529_v5, 0.0 }
 0x210   : > { %v1082_v27 = vpop.f32.mrf.mxu1  ;;  %v1293_v22 = vadd.f32 %v1292_v28, %v3767_v45 }
 0x211   : > { %v1083_v33 = vadd.f32 %v1082_v27, %v3769_v46  ;;  %v2636_v34 = vpop.f32.mrf.mxu0  ;;  %v1537_v27 = vsel %vm1533_vm7, 1, %v3297_v12 }
 0x212   : > { %v1084_v10 = vpop.f32.mrf.mxu1  ;;  %v1304_v43 = vadd.f32 %v2636_v34, %v3767_v45 }
 0x213   : > { %v1321_v23 = vpack.c.bf16 %v1083_v33, %v1080_v32  ;;  %v1295_v19 = vpop.f32.mrf.mxu0  ;;  %v1530_v33 = vld [vmem:[%s3646_s12 + $0x3] sm:$0x1] }
 0x214   : > { %v1087_v14 = vpop.f32.mrf.mxu1  ;;  %vm1534_vm9 = vcmp.gt.f32.partialorder %v1530_v33, 0.0 }
 0x215   : > { %v1088_v18 = vadd.f32 %v1087_v14, %v3769_v46  ;;  %v1538_v32 = vsel %vm1534_vm9, 1, %v3297_v12 }
 0x216   : > { %v1089_v16 = vpop.f32.mrf.mxu1  ;;  %2656 = vmatpush3.bf16.xpose.msra.mxu0 %v1319_v7  ;;  %v1554_v35 = vrot.slane %v1538_v32, %v3713_v61 }
 0x217   : > { %2669 = vmatprep.subr.bf16.mxu0 %v1324_v13 }
 0x218   : > { %v1090_v17 = vpop.f32.mrf.mxu1  ;;  %vm1558_vm10 = vcmp.eq.s32.totalorder %v1554_v35, 1 }
 0x219   : > { %v1091_v37 = vadd.f32 %v1090_v17, %v3769_v46  ;;  %v1301_v46 = vadd.f32 %v2635_v15, %v3767_v45 }
 0x21a   : > { %v1092_v21 = vpop.f32.mrf.mxu1 }
 0x21b   : > { %v1322_v2 = vpack.c.bf16 %v1091_v37, %v1088_v18  ;;  %v1330_v53 = vpack.c.bf16 %v1304_v43, %v1301_v46 }
 0x21d   : > { %2658 = vmatmul.mubr.bf16.vlgmr.msra.gmra.mxu0 %v1312_v24  ;;  %2661 = vmatprep.subr.bf16.mxu1 %v1322_v2  ;;  %v1296_v24 = vadd.f32 %v1295_v19, %v3767_v45 }
 0x21e   : > { %2662 = vmatpush3.bf16.xpose.msra.mxu1 %v1322_v2  ;;  %2670 = vmatpush3.bf16.msra.mxu0 %v1324_v13  ;;  %v1550_v13 = vrot.slane %v1537_v27, %v3713_v61 }
 0x21f   : > { %2663 = vmatprep.subr.bf16.mxu1 %v1321_v23  ;;  %2671 = vmatprep.subr.bf16.mxu0 %v1323_v25  ;;  %v1329_v38 = vpack.c.bf16 %v1296_v24, %v1293_v22 }
 0x220   : > { %vm1557_vm8 = vcmp.eq.s32.totalorder %v1550_v13, 1 }
 0x222   : > { %2672 = vmatpush3.bf16.msra.mxu0 %v1323_v25 }
 0x223   : > { %2677 = vmatprep.subr.bf16.mxu0 %v3829_v36 }
 0x226   : > { %2664 = vmatpush3.bf16.xpose.msra.mxu1 %v1321_v23 }
 0x227   : > { %2693 = vmatprep.subr.bf16.mxu1 %v1330_v53 }
 0x22d   : > { %2666 = vmatmul.mubr.bf16.vlgmr.msra.gmra.mxu1 %v1314_v30 }
 0x22e   : > { %2694 = vmatpush3.bf16.msra.mxu1 %v1330_v53 }
 0x22f   : > { %2695 = vmatprep.subr.bf16.mxu1 %v1329_v38 }
 0x232   : > { %2696 = vmatpush3.bf16.msra.mxu1 %v1329_v38 }
 0x2bd   : > { %v2643_v20 = vpop.f32.mrf.mxu0 }
 0x2be   : > { %v3842_v45 = vsel %vm1555_vm3, %v2643_v20, -1e+09 }
 0x2bf   : > { %v1365_v42 = vpop.f32.mrf.mxu0  ;;  %v1582_v26 = vsel %vm1575_vm4, %v3842_v45, -inf }
 0x2c0   : > { %v3846_v29 = vsel %vm1555_vm3, %v1365_v42, -1e+09  ;;  %1583 = vmax.xlane.f32.xlu1 %v1582_v26 }
 0x2c1   : > { %v2644_v30 = vpop.f32.mrf.mxu0  ;;  %v1576_v44 = vsel %vm1575_vm4, %v3846_v29, -inf }
 0x2c2   : > { %v3850_v47 = vsel %vm1555_vm3, %v2644_v30, -1e+09  ;;  %1577 = vmax.xlane.f32.xlu0 %v1576_v44 }
 0x2c3   : > { %v1368_v50 = vpop.f32.mrf.mxu0  ;;  %v1585_v52 = vsel %vm1575_vm4, %v3850_v47, -inf }
 0x2c4   : > { %v3855_v54 = vsel %vm1555_vm3, %v1368_v50, -1e+09  ;;  %1586 = vmax.xlane.f32.xlu1 %v1585_v52 }
 0x2c5   : > { %v1579_v55 = vsel %vm1575_vm4, %v3855_v54, -inf }
 0x2c6   : > { %1580 = vmax.xlane.f32.xlu0 %v1579_v55 }
 0x2cd   : > { %v2651_v58 = vpop.f32.mrf.mxu1 }
 0x2ce   : > { %v3865_v4 = vsel %vm1556_vm6, %v2651_v58, -1e+09 }
 0x2cf   : > { %v1414_v59 = vpop.f32.mrf.mxu1  ;;  %v1594_v9 = vsel %vm1575_vm4, %v3865_v4, -inf }
 0x2d0   : > { %v3861_v60 = vsel %vm1556_vm6, %v1414_v59, -1e+09 }
 0x2d1   : > { %v2652_v62 = vpop.f32.mrf.mxu1  ;;  %v1588_v3 = vsel %vm1575_vm4, %v3861_v60, -inf }
 0x2d2   : > { %1589 = vmax.xlane.f32.xlu0 %v1588_v3  ;;  %v3874_v1 = vsel %vm1556_vm6, %v2652_v62, -1e+09 }
 0x2d3   : > { %v1417_v6 = vpop.f32.mrf.mxu1  ;;  %v1597_v10 = vsel %vm1575_vm4, %v3874_v1, -inf }
 0x2d4   : > { %v3868_v7 = vsel %vm1556_vm6, %v1417_v6, -1e+09 }
 0x2d5   : > { %v1591_v31 = vsel %vm1575_vm4, %v3868_v7, -inf }
 0x2d6   : > { %1592 = vmax.xlane.f32.xlu1 %v1591_v31  ;;  %1595 = vmax.xlane.f32.xlu0 %v1594_v9 }
 0x2da   : > { %1598 = vmax.xlane.f32.xlu1 %v1597_v10 }
 0x2dd   : > { %v2659_v14 = vpop.f32.mrf.mxu0 }
 0x2de   : > { %v3884_v17 = vsel %vm1557_vm8, %v2659_v14, -1e+09 }
 0x2df   : > { %v1463_v16 = vpop.f32.mrf.mxu0  ;;  %v1606_v21 = vsel %vm1575_vm4, %v3884_v17, -inf }
 0x2e0   : > { %v3880_v8 = vsel %vm1557_vm8, %v1463_v16, -1e+09 }
 0x2e1   : > { %v2660_v11 = vpop.f32.mrf.mxu0  ;;  %v1600_v15 = vsel %vm1575_vm4, %v3880_v8, -inf }
 0x2e2   : > { %1601 = vmax.xlane.f32.xlu0 %v1600_v15  ;;  %v3893_v28 = vsel %vm1557_vm8, %v2660_v11, -1e+09 }
 0x2e3   : > { %v1466_v18 = vpop.f32.mrf.mxu0  ;;  %v1609_v2 = vsel %vm1575_vm4, %v3893_v28, -inf }
 0x2e4   : > { %v3887_v37 = vsel %vm1557_vm8, %v1466_v18, -1e+09 }
 0x2e5   : > { %v1603_v25 = vsel %vm1575_vm4, %v3887_v37, -inf }
 0x2e6   : > { %1607 = vmax.xlane.f32.xlu0 %v1606_v21  ;;  %1604 = vmax.xlane.f32.xlu1 %v1603_v25 }
 0x2ea   : > { %1610 = vmax.xlane.f32.xlu1 %v1609_v2 }
 0x2ed   : > { %v2667_v41 = vpop.f32.mrf.mxu1 }
 0x2ee   : > { %v3903_v53 = vsel %vm1558_vm10, %v2667_v41, -1e+09 }
 0x2ef   : > { %v1512_v23 = vpop.f32.mrf.mxu1  ;;  %v1618_v22 = vsel %vm1575_vm4, %v3903_v53, -inf }
 0x2f0   : > { %v3899_v34 = vsel %vm1558_vm10, %v1512_v23, -1e+09 }
 0x2f1   : > { %v2668_v46 = vpop.f32.mrf.mxu1  ;;  %v1612_v43 = vsel %vm1575_vm4, %v3899_v34, -inf }
 0x2f2   : > { %1613 = vmax.xlane.f32.xlu0 %v1612_v43  ;;  %v3911_v24 = vsel %vm1558_vm10, %v2668_v46, -1e+09 }
 0x2f3   : > { %v1515_v19 = vpop.f32.mrf.mxu1  ;;  %v1621_v38 = vsel %vm1575_vm4, %v3911_v24, -inf }
 0x2f4   : > { %v3905_v12 = vsel %vm1558_vm10, %v1515_v19, -1e+09 }
 0x2f5   : > { %v1615_v61 = vsel %vm1575_vm4, %v3905_v12, -inf }
 0x2f6   : > { %1619 = vmax.xlane.f32.xlu0 %v1618_v22  ;;  %1616 = vmax.xlane.f32.xlu1 %v1615_v61 }
 0x2fa   : > { %1622 = vmax.xlane.f32.xlu1 %v1621_v38 }
 0x349   : > { %v1584_v63 = vpop.xlane.xlu1 %1583 }
 0x34a   : > { %v1626_v39 = vsub.f32 %v3842_v45, %v1584_v63 }
 0x34b   : > { %v1578_v40 = vpop.xlane.xlu0 %1577 }
 0x34c   : > { %v1624_v20 = vsub.f32 %v3846_v29, %v1578_v40  ;;  %v1644_v26 = vmul.f32 1.442695, %v1626_v39 }
 0x34d   : > { %v1587_v42 = vpop.xlane.xlu1 %1586 }
 0x34e   : > { %v1640_v30 = vmul.f32 1.442695, %v1624_v20  ;;  %v1627_v44 = vsub.f32 %v3850_v47, %v1587_v42 }
 0x34f   : > { %v1581_v49 = vpop.xlane.xlu0 %1580 }
 0x350   : > { %2917 = vpow2.f32 %v1640_v30  ;;  %v1625_v50 = vsub.f32 %v3855_v54, %v1581_v49  ;;  %v1646_v52 = vmul.f32 1.442695, %v1627_v44 }
 0x351   : > { %2919 = vpow2.f32 %v1644_v26 }
 0x352   : > { %v1642_v55 = vmul.f32 1.442695, %v1625_v50 }
 0x354   : > { %2921 = vpow2.f32 %v1642_v55 }
 0x355   : > { %2923 = vpow2.f32 %v1646_v52 }
 0x35b   : > { %v1590_v56 = vpop.xlane.xlu0 %1589 }
 0x35c   : > { %v1628_v45 = vsub.f32 %v3861_v60, %v1590_v56 }
 0x35d   : > { %v3920_v57 = vpop.eup %2917 }
 0x35e   : > { %v1648_v29 = vmul.f32 1.442695, %v1628_v45  ;;  %v1672_v58 = vsel %vm1575_vm4, %v3920_v57, 0.0  ;;  %v3924_v59 = vpop.eup %2919 }
 0x35f   : > { %v1593_v47 = vpop.xlane.xlu1 %1592  ;;  %v1596_v62 = vpop.xlane.xlu0 %1595  ;;  %1673 = vadd.xlane.f32.xlu0 %v1672_v58  ;;  %v1678_v31 = vsel %vm1575_vm4, %v3924_v59, 0.0 }
 0x360   : > { %2925 = vpow2.f32 %v1648_v29  ;;  %v1629_v54 = vsub.f32 %v3868_v7, %v1593_v47  ;;  %v1630_v3 = vsub.f32 %v3865_v4, %v1596_v62 }
 0x361   : > { %v3928_v5 = vpop.eup %2921 }
 0x362   : > { %v1650_v6 = vmul.f32 1.442695, %v1629_v54  ;;  %v1652_v60 = vmul.f32 1.442695, %v1630_v3  ;;  %v1675_v9 = vsel %vm1575_vm4, %v3928_v5, 0.0  ;;  %v3934_v27 = vpop.eup %2923 }
 0x363   : > { %v1599_v10 = vpop.xlane.xlu1 %1598  ;;  %1679 = vadd.xlane.f32.xlu0 %v1678_v31  ;;  %1676 = vadd.xlane.f32.xlu1 %v1675_v9  ;;  %v1681_v13 = vsel %vm1575_vm4, %v3934_v27, 0.0 }
 0x364   : > { %2927 = vpow2.f32 %v1650_v6  ;;  %v1631_v7 = vsub.f32 %v3874_v1, %v1599_v10 }
 0x365   : > { %2929 = vpow2.f32 %v1652_v60 }
 0x366   : > { %v1654_v4 = vmul.f32 1.442695, %v1631_v7 }
 0x367   : > { %1682 = vadd.xlane.f32.xlu1 %v1681_v13 }
 0x368   : > { %2931 = vpow2.f32 %v1654_v4 }
 0x36b   : > { %v1602_v14 = vpop.xlane.xlu0 %1601 }
 0x36c   : > { %v1632_v16 = vsub.f32 %v3880_v8, %v1602_v14 }
 0x36d   : > { %v3940_v11 = vpop.eup %2925 }
 0x36e   : > { %v1656_v15 = vmul.f32 1.442695, %v1632_v16  ;;  %v1684_v33 = vsel %vm1575_vm4, %v3940_v11, 0.0 }
 0x36f   : > { %1685 = vadd.xlane.f32.xlu0 %v1684_v33  ;;  %v1608_v18 = vpop.xlane.xlu0 %1607  ;;  %v1605_v21 = vpop.xlane.xlu1 %1604 }
 0x370   : > { %2933 = vpow2.f32 %v1656_v15  ;;  %v1634_v1 = vsub.f32 %v3884_v17, %v1608_v18  ;;  %v1633_v25 = vsub.f32 %v3887_v37, %v1605_v21 }
 0x371   : > { %v3946_v32 = vpop.eup %2927 }
 0x372   : > { %v3948_v2 = vpop.eup %2929  ;;  %v1660_v35 = vmul.f32 1.442695, %v1634_v1  ;;  %v1658_v8 = vmul.f32 1.442695, %v1633_v25  ;;  %v1687_v41 = vsel %vm1575_vm4, %v3946_v32, 0.0 }
 0x373   : > { %v1690_v23 = vsel %vm1575_vm4, %v3948_v2, 0.0  ;;  %1688 = vadd.xlane.f32.xlu1 %v1687_v41  ;;  %v1611_v46 = vpop.xlane.xlu1 %1610 }
 0x374   : > { %2935 = vpow2.f32 %v1660_v35  ;;  %1691 = vadd.xlane.f32.xlu0 %v1690_v23  ;;  %v1635_v17 = vsub.f32 %v3893_v28, %v1611_v46 }
 0x375   : > { %v3955_v43 = vpop.eup %2931  ;;  %2937 = vpow2.f32 %v1658_v8 }
 0x376   : > { %v1662_v37 = vmul.f32 1.442695, %v1635_v17  ;;  %v1693_v19 = vsel %vm1575_vm4, %v3955_v43, 0.0 }
 0x377   : > { %1694 = vadd.xlane.f32.xlu1 %v1693_v19 }
 0x378   : > { %2939 = vpow2.f32 %v1662_v37 }
 0x37b   : > { %v1614_v22 = vpop.xlane.xlu0 %1613 }
 0x37c   : > { %v1636_v61 = vsub.f32 %v3899_v34, %v1614_v22 }
 0x37d   : > { %v3960_v38 = vpop.eup %2933 }
 0x37e   : > { %v1664_v63 = vmul.f32 1.442695, %v1636_v61  ;;  %v1696_v39 = vsel %vm1575_vm4, %v3960_v38, 0.0 }
 0x37f   : > { %1697 = vadd.xlane.f32.xlu0 %v1696_v39  ;;  %v1620_v28 = vpop.xlane.xlu0 %1619  ;;  %v1617_v40 = vpop.xlane.xlu1 %1616 }
 0x380   : > { %2941 = vpow2.f32 %v1664_v63  ;;  %v1638_v20 = vsub.f32 %v3903_v53, %v1620_v28  ;;  %v1637_v42 = vsub.f32 %v3905_v12, %v1617_v40 }
 0x381   : > { %v3966_v26 = vpop.eup %2935 }
 0x382   : > { %v3968_v30 = vpop.eup %2937  ;;  %v1668_v44 = vmul.f32 1.442695, %v1638_v20  ;;  %v1666_v34 = vmul.f32 1.442695, %v1637_v42  ;;  %v1702_v49 = vsel %vm1575_vm4, %v3966_v26, 0.0 }
 0x383   : > { %1703 = vadd.xlane.f32.xlu0 %v1702_v49  ;;  %v1699_v50 = vsel %vm1575_vm4, %v3968_v30, 0.0  ;;  %v1623_v52 = vpop.xlane.xlu1 %1622 }
 0x384   : > { %2943 = vpow2.f32 %v1668_v44  ;;  %1700 = vadd.xlane.f32.xlu1 %v1699_v50  ;;  %v1639_v53 = vsub.f32 %v3911_v24, %v1623_v52  ;;  %v2910_v50 = vld [vmem:[#allocation14 + $0x30] sm:$0xff]   ;;  %v2912_v52 = vld [vmem:[#allocation14 + $0x20] sm:$0xff]  }
 0x385   : > { %v3975_v55 = vpop.eup %2939  ;;  %2945 = vpow2.f32 %v1666_v34 }
 0x386   : > { %v1670_v12 = vmul.f32 1.442695, %v1639_v53  ;;  %v1705_v56 = vsel %vm1575_vm4, %v3975_v55, 0.0 }
 0x388   : > { %2947 = vpow2.f32 %v1670_v12  ;;  %1706 = vadd.xlane.f32.xlu1 %v1705_v56 }
 0x38d   : > { %v3979_v45 = vpop.eup %2941 }
 0x38e   : > { %v1708_v29 = vsel %vm1575_vm4, %v3979_v45, 0.0 }
 0x38f   : > { %1709 = vadd.xlane.f32.xlu0 %v1708_v29  ;;  %v2913_v29 = vld [vmem:[#allocation14 + $0x18] sm:$0xff]  }
 0x391   : > { %v3983_v58 = vpop.eup %2943 }
 0x392   : > { %v3985_v47 = vpop.eup %2945  ;;  %v1714_v24 = vsel %vm1575_vm4, %v3983_v58, 0.0 }
 0x393   : > { %1715 = vadd.xlane.f32.xlu0 %v1714_v24  ;;  %v1711_v62 = vsel %vm1575_vm4, %v3985_v47, 0.0 }
 0x394   : > { %1712 = vadd.xlane.f32.xlu1 %v1711_v62 }
 0x395   : > { %v3991_v54 = vpop.eup %2947 }
 0x396   : > { %v1717_v3 = vsel %vm1575_vm4, %v3991_v54, 0.0 }
 0x398   : > { %1718 = vadd.xlane.f32.xlu1 %v1717_v3 }
 0x3e8   : > { %v1674_v6 = vpop.xlane.xlu0 %1673 }
 0x3e9   : > { %2949 = vrcp.f32 %v1674_v6 }
 0x3ec   : > { %v1680_v60 = vpop.xlane.xlu0 %1679  ;;  %v1677_v31 = vpop.xlane.xlu1 %1676 }
 0x3ed   : > { %2951 = vrcp.f32 %v1677_v31 }
 0x3ee   : > { %2953 = vrcp.f32 %v1680_v60  ;;  %v2914_v60 = vld [vmem:[#allocation14 + $0x10] sm:$0xff]  }
 0x3f0   : > { %v1683_v9 = vpop.xlane.xlu1 %1682 }
 0x3f1   : > { %2955 = vrcp.f32 %v1683_v9 }
 0x3f6   : > { %v2950_v7 = vpop.eup %2949 }
 0x3f7   : > { %v1736_v16 = vmul.f32 %v2950_v7, %v3920_v57 }
 0x3f8   : > { %v1686_v10 = vpop.xlane.xlu0 %1685 }
 0x3f9   : > { %2957 = vrcp.f32 %v1686_v10 }
 0x3fa   : > { %v2952_v4 = vpop.eup %2951 }
 0x3fb   : > { %v2954_v13 = vpop.eup %2953  ;;  %v1737_v15 = vmul.f32 %v2952_v4, %v3928_v5 }
 0x3fc   : > { %v1689_v14 = vpop.xlane.xlu1 %1688  ;;  %v1738_v1 = vmul.f32 %v2954_v13, %v3924_v59 }
 0x3fd   : > { %v1692_v33 = vpop.xlane.xlu0 %1691  ;;  %2959 = vrcp.f32 %v1689_v14  ;;  %v1752_v21 = vpack.c.bf16 %v1737_v15, %v1736_v16 }
 0x3fe   : > { %v2956_v18 = vpop.eup %2955  ;;  %2961 = vrcp.f32 %v1692_v33 }
 0x3ff   : > { %v1739_v25 = vmul.f32 %v2956_v18, %v3934_v27  ;;  %2673 = vmatprep.mubr.msk.bf16.mxu0 %vm1575_vm4, %v1752_v21 }
 0x400   : > { %v1695_v35 = vpop.xlane.xlu1 %1694 }
 0x401   : > { %2963 = vrcp.f32 %v1695_v35  ;;  %v1753_v8 = vpack.c.bf16 %v1739_v25, %v1738_v1 }
 0x403   : > { %2674 = vmatmul.mubr.msk.bf16.vlgmr.msra.gmra.mxu0 %vm1575_vm4, %v1753_v8 }
 0x404   : > { %2678 = vmatpush3.bf16.msra.mxu0 %v3829_v36 }
 0x405   : > { %2679 = vmatprep.subr.bf16.mxu0 %v3779_v0 }
 0x406   : > { %v2958_v57 = vpop.eup %2957 }
 0x407   : > { %v1740_v27 = vmul.f32 %v2958_v57, %v3940_v11  ;;  %v2909_v11 = vld [vmem:[#allocation14 + $0x38] sm:$0xff]  }
 0x408   : > { %2680 = vmatpush3.bf16.msra.mxu0 %v3779_v0  ;;  %v1698_v5 = vpop.xlane.xlu0 %1697 }
 0x409   : > { %2685 = vmatprep.subr.bf16.mxu0 %v3794_v48  ;;  %2965 = vrcp.f32 %v1698_v5 }
 0x40a   : > { %v2960_v59 = vpop.eup %2959 }
 0x40b   : > { %v1741_v41 = vmul.f32 %v2960_v59, %v3946_v32  ;;  %v2962_v23 = vpop.eup %2961 }
 0x40c   : > { %v1704_v46 = vpop.xlane.xlu0 %1703  ;;  %v1742_v36 = vmul.f32 %v2962_v23, %v3948_v2 }
 0x40d   : > { %v1701_v17 = vpop.xlane.xlu1 %1700  ;;  %v1754_v37 = vpack.c.bf16 %v1741_v41, %v1740_v27 }
 0x40e   : > { %v2964_v19 = vpop.eup %2963  ;;  %2967 = vrcp.f32 %v1701_v17 }
 0x40f   : > { %2681 = vmatprep.mubr.msk.bf16.mxu0 %vm1575_vm4, %v1754_v37  ;;  %v1743_v0 = vmul.f32 %v2964_v19, %v3955_v43  ;;  %2969 = vrcp.f32 %v1704_v46  ;;  %v2469_v46 = vld [vmem:[%s4108_s9] ss:$0 sm:$0xff] }
 0x411   : > { %v1707_v22 = vpop.xlane.xlu1 %1706  ;;  %v1755_v61 = vpack.c.bf16 %v1743_v0, %v1742_v36 }
 0x412   : > { %2971 = vrcp.f32 %v1707_v22 }
 0x413   : > { %2682 = vmatmul.mubr.msk.bf16.vlgmr.msra.gmra.mxu0 %vm1575_vm4, %v1755_v61 }
 0x414   : > { %2686 = vmatpush3.bf16.msra.mxu0 %v3794_v48 }
 0x415   : > { %2687 = vmatprep.subr.bf16.mxu0 %v3797_v51 }
 0x416   : > { %v2966_v63 = vpop.eup %2965 }
 0x417   : > { %v1744_v2 = vmul.f32 %v2966_v63, %v3960_v38  ;;  %v2911_v38 = vld [vmem:[#allocation14 + $0x28] sm:$0xff]  }
 0x418   : > { %2688 = vmatpush3.bf16.msra.mxu0 %v3797_v51  ;;  %v1710_v32 = vpop.xlane.xlu0 %1709 }
 0x419   : > { %2701 = vmatprep.subr.bf16.mxu0 %v2909_v11  ;;  %2973 = vrcp.f32 %v1710_v32 }
 0x41b   : > { %v2968_v39 = vpop.eup %2967 }
 0x41c   : > { %v1745_v43 = vmul.f32 %v2968_v39, %v3968_v30  ;;  %v2970_v28 = vpop.eup %2969  ;;  %v1716_v40 = vpop.xlane.xlu0 %1715 }
 0x41d   : > { %v1713_v20 = vpop.xlane.xlu1 %1712  ;;  %v1746_v51 = vmul.f32 %v2970_v28, %v3966_v26 }
 0x41e   : > { %2975 = vrcp.f32 %v1713_v20  ;;  %v1756_v42 = vpack.c.bf16 %v1745_v43, %v1744_v2 }
 0x41f   : > { %v2972_v48 = vpop.eup %2971  ;;  %2977 = vrcp.f32 %v1716_v40 }
 0x420   : > { %2689 = vmatprep.mubr.msk.bf16.mxu0 %vm1575_vm4, %v1756_v42  ;;  %v1747_v44 = vmul.f32 %v2972_v48, %v3975_v55 }
 0x421   : > { %v1719_v34 = vpop.xlane.xlu1 %1718 }
 0x422   : > { %2979 = vrcp.f32 %v1719_v34  ;;  %v1757_v49 = vpack.c.bf16 %v1747_v44, %v1746_v51 }
 0x424   : > { %2690 = vmatmul.mubr.msk.bf16.vlgmr.msra.gmra.mxu0 %vm1575_vm4, %v1757_v49 }
 0x425   : > { %2702 = vmatpush3.bf16.msra.mxu0 %v2909_v11 }
 0x426   : > { %2703 = vmatprep.subr.bf16.mxu0 %v2910_v50  ;;  %v2974_v30 = vpop.eup %2973 }
 0x427   : > { %v1748_v12 = vmul.f32 %v2974_v30, %v3979_v45  ;;  %v2915_v45 = vld [vmem:[#allocation14 + $0x8] sm:$0xff]  }
 0x429   : > { %2704 = vmatpush3.bf16.msra.mxu0 %v2910_v50 }
 0x42a   : > { %2705 = vmatprep.subr.bf16.mxu0 %v2911_v38 }
 0x42b   : > { %v2976_v53 = vpop.eup %2975 }
 0x42c   : > { %v1749_v26 = vmul.f32 %v2976_v53, %v3985_v47  ;;  %v2978_v56 = vpop.eup %2977  ;;  %v2916_v47 = vld [vmem:[#allocation14] sm:$0xff]  }
 0x42d   : > { %2706 = vmatpush3.bf16.msra.mxu0 %v2911_v38  ;;  %v1750_v62 = vmul.f32 %v2978_v56, %v3983_v58 }
 0x42e   : > { %v1758_v55 = vpack.c.bf16 %v1749_v26, %v1748_v12  ;;  %2707 = vmatprep.subr.bf16.mxu0 %v2912_v52 }
 0x42f   : > { %v2980_v24 = vpop.eup %2979 }
 0x430   : > { %v1751_v3 = vmul.f32 %v2980_v24, %v3991_v54  ;;  %2697 = vmatprep.mubr.msk.bf16.mxu1 %vm1575_vm4, %v1758_v55 }
 0x431   : > { %2708 = vmatpush3.bf16.msra.mxu0 %v2912_v52 }
 0x432   : > { %v1759_v6 = vpack.c.bf16 %v1751_v3, %v1750_v62  ;;  %2709 = vmatprep.subr.bf16.mxu0 %v2913_v29 }
 0x434   : > { %2698 = vmatmul.mubr.msk.bf16.vlgmr.msra.gmra.mxu1 %vm1575_vm4, %v1759_v6 }
 0x435   : > { %2710 = vmatpush3.bf16.msra.mxu0 %v2913_v29 }
 0x436   : > { %2711 = vmatprep.subr.bf16.mxu0 %v2914_v60 }
 0x439   : > { %2712 = vmatpush3.bf16.msra.mxu0 %v2914_v60 }
 0x43a   : > { %2713 = vmatprep.subr.bf16.mxu0 %v2915_v45 }
 0x43d   : > { %2714 = vmatpush3.bf16.msra.mxu0 %v2915_v45 }
 0x43e   : > { %2715 = vmatprep.subr.bf16.mxu0 %v2916_v47 }
 0x441   : > { %2716 = vmatpush3.bf16.msra.mxu0 %v2916_v47 }
 0x4c3   : > { %v2675_v58 = vpop.f32.mrf.mxu0 }
 0x4c5   : > { %v1800_v31 = vpop.f32.mrf.mxu0 }
 0x4c7   : > { %v2676_v54 = vpop.f32.mrf.mxu0 }
 0x4c8   : > { %v1981_v7 = vpack.c.bf16 %v2676_v54, %v2675_v58 }
 0x4c9   : > { %v1803_v9 = vpop.f32.mrf.mxu0 }
 0x4ca   : > { %v1980_v10 = vpack.c.bf16 %v1803_v9, %v1800_v31 }
 0x4cc   : > { %2717 = vmatprep.mubr.bf16.mxu0 %v1980_v10 }
 0x4cd   : > { %2718 = vmatmul.mubr.bf16.vlgmr.msra.gmra.mxu0 %v1981_v7 }
 0x4d3   : > { %v2683_v4 = vpop.f32.mrf.mxu0 }
 0x4d5   : > { %v1855_v13 = vpop.f32.mrf.mxu0 }
 0x4d7   : > { %v2684_v14 = vpop.f32.mrf.mxu0 }
 0x4d8   : > { %v1983_v33 = vpack.c.bf16 %v2684_v14, %v2683_v4 }
 0x4d9   : > { %v1858_v16 = vpop.f32.mrf.mxu0 }
 0x4da   : > { %v1982_v15 = vpack.c.bf16 %v1858_v16, %v1855_v13 }
 0x4dc   : > { %2721 = vmatprep.mubr.bf16.mxu0 %v1982_v15 }
 0x4dd   : > { %2722 = vmatmul.mubr.bf16.gmra.mxu0 %v1983_v33 }
 0x4e4   : > { %v2691_v18 = vpop.f32.mrf.mxu0 }
 0x4e6   : > { %v1910_v21 = vpop.f32.mrf.mxu0 }
 0x4e8   : > { %v2692_v1 = vpop.f32.mrf.mxu0 }
 0x4e9   : > { %v1985_v8 = vpack.c.bf16 %v2692_v1, %v2691_v18 }
 0x4ea   : > { %v1913_v25 = vpop.f32.mrf.mxu0 }
 0x4eb   : > { %v1984_v35 = vpack.c.bf16 %v1913_v25, %v1910_v21 }
 0x4ed   : > { %2725 = vmatprep.mubr.bf16.mxu0 %v1984_v35 }
 0x4ee   : > { %2726 = vmatmul.mubr.bf16.gmra.mxu0 %v1985_v8 }
 0x4f4   : > { %v2699_v57 = vpop.f32.mrf.mxu1 }
 0x4f6   : > { %v1965_v5 = vpop.f32.mrf.mxu1 }
 0x4f8   : > { %v2700_v59 = vpop.f32.mrf.mxu1 }
 0x4f9   : > { %v1987_v23 = vpack.c.bf16 %v2700_v59, %v2699_v57 }
 0x4fa   : > { %v1968_v27 = vpop.f32.mrf.mxu1 }
 0x4fb   : > { %v1986_v41 = vpack.c.bf16 %v1968_v27, %v1965_v5 }
 0x4fd   : > { %2729 = vmatprep.mubr.bf16.mxu0 %v1986_v41 }
 0x4fe   : > { %2730 = vmatmul.mubr.bf16.gmra.mxu0 %v1987_v23 }
 0x58d   : > { %v2719_v17 = vpop.f32.mrf.mxu0 }
 0x58e   : > { %v2102_v37 = vadd.f32 %v2719_v17, %v2469_v46 }
 0x58f   : > { %v2093_v19 = vpop.f32.mrf.mxu0 }
 0x590   : > { %2158 = vst [vmem:[%s4031_s10 + $0x10] sm:$0xff] %v2102_v37  ;;  %v2094_v36 = vadd.f32 %v2469_v46, %v2093_v19 }
 0x591   : > { %v2720_v0 = vpop.f32.mrf.mxu0 }
 0x592   : > { %2156 = vst [vmem:[%s4031_s10] sm:$0xff] %v2094_v36  ;;  %v2105_v22 = vadd.f32 %v2720_v0, %v2469_v46 }
 0x593   : > { %v2096_v61 = vpop.f32.mrf.mxu0 }
 0x594   : > { %2159 = vst [vmem:[%s4031_s10 + $0x18] sm:$0xff] %v2105_v22  ;;  %v2097_v11 = vadd.f32 %v2469_v46, %v2096_v61 }
 0x596   : > { %2157 = vst [vmem:[%s4031_s10 + $0x8] sm:$0xff] %v2097_v11 }
 0x59d   : > { %v2723_v32 = vpop.f32.mrf.mxu0 }
 0x59e   : > { %v2118_v63 = vadd.f32 %v2723_v32, %v2469_v46 }
 0x59f   : > { %v2109_v39 = vpop.f32.mrf.mxu0 }
 0x5a0   : > { %2162 = vst [vmem:[%s4031_s10 + $0x30] sm:$0xff] %v2118_v63  ;;  %v2110_v2 = vadd.f32 %v2469_v46, %v2109_v39 }
 0x5a1   : > { %v2724_v43 = vpop.f32.mrf.mxu0 }
 0x5a2   : > { %2160 = vst [vmem:[%s4031_s10 + $0x20] sm:$0xff] %v2110_v2  ;;  %v2121_v28 = vadd.f32 %v2724_v43, %v2469_v46 }
 0x5a3   : > { %v2112_v40 = vpop.f32.mrf.mxu0 }
 0x5a4   : > { %2163 = vst [vmem:[%s4031_s10 + $0x38] sm:$0xff] %v2121_v28  ;;  %v2113_v20 = vadd.f32 %v2469_v46, %v2112_v40 }
 0x5a6   : > { %2161 = vst [vmem:[%s4031_s10 + $0x28] sm:$0xff] %v2113_v20 }
 0x5ae   : > { %v2727_v42 = vpop.f32.mrf.mxu0 }
 0x5af   : > { %v2134_v48 = vadd.f32 %v2727_v42, %v2469_v46 }
 0x5b0   : > { %v2125_v51 = vpop.f32.mrf.mxu0 }
 0x5b1   : > { %2166 = vst [vmem:[%s4031_s10 + $0x50] sm:$0xff] %v2134_v48  ;;  %v2126_v44 = vadd.f32 %v2469_v46, %v2125_v51 }
 0x5b2   : > { %v2728_v34 = vpop.f32.mrf.mxu0 }
 0x5b3   : > { %2164 = vst [vmem:[%s4031_s10 + $0x40] sm:$0xff] %v2126_v44  ;;  %v2137_v49 = vadd.f32 %v2728_v34, %v2469_v46 }
 0x5b4   : > { %v2128_v50 = vpop.f32.mrf.mxu0 }
 0x5b5   : > { %2167 = vst [vmem:[%s4031_s10 + $0x58] sm:$0xff] %v2137_v49  ;;  %v2129_v38 = vadd.f32 %v2469_v46, %v2128_v50 }
 0x5b7   : > { %2165 = vst [vmem:[%s4031_s10 + $0x48] sm:$0xff] %v2129_v38 }
 0x5be   : > { %v2731_v30 = vpop.f32.mrf.mxu0 }
 0x5bf   : > { %v2150_v52 = vadd.f32 %v2731_v30, %v2469_v46 }
 0x5c0   : > { %v2141_v53 = vpop.f32.mrf.mxu0 }
 0x5c1   : > { %2170 = vst [vmem:[%s4031_s10 + $0x70] sm:$0xff] %v2150_v52  ;;  %v2142_v12 = vadd.f32 %v2469_v46, %v2141_v53 }
 0x5c2   : > { %v2732_v26 = vpop.f32.mrf.mxu0 }
 0x5c3   : > { %2168 = vst [vmem:[%s4031_s10 + $0x60] sm:$0xff] %v2142_v12  ;;  %v2153_v56 = vadd.f32 %v2732_v26, %v2469_v46 }
 0x5c4   : > { %v2144_v55 = vpop.f32.mrf.mxu0 }
 0x5c5   : > { %2171 = vst [vmem:[%s4031_s10 + $0x78] sm:$0xff] %v2153_v56  ;;  %v2145_v29 = vadd.f32 %v2469_v46, %v2144_v55 }
 0x5c7   : > { %2169 = vst [vmem:[%s4031_s10 + $0x68] sm:$0xff] %v2145_v29 }
 0x5c8   : > { %3210 = shalt.err (!%p3207_p0)
}
 0x5c9   : > { %s3211_s20 = scalar_lea.hbm %s4052_s27, 2048  ;;  %s3215_s28 = scalar_lea.hbm %s4167_s25, 4096 }
 0x5ca   : > { %p3212_p9 = scmp.ne.s32.totalorder %s4052_s27, %s3211_s20  ;;  %p3216_p8 = scmp.lt.s32.totalorder %s4052_s27, %s4167_s25 }
 0x5cb   : > { %p3217_p11 = scmp.lt.s32.totalorder %s3215_s28, %s3211_s20 }
 0x5cc   : > { %p3213_p1 = pnand %p3212_p9, %p4168_p10 }
 0x5cd   : > { %p3218_p12 = por %p3217_p11, %p3216_p8 }
 0x5ce   : > { %p3214_p4 = pneg %p3213_p1 }
 0x5d0   : > { %p3219_p6 = pnand %p3218_p12, %p3214_p4 }
 0x5d2   : > { %3222 = shalt.err (!%p3219_p6)
}
 0x5d3   : > { %s3299_s19 = smov 128   ;;  %s3300_s26 = smov 8  }
 0x5d4   : > { %2757 = dma.vmem_to_hbm [thread:$0]  (%p4168_p10), %s4054_s1, 2048, %s4052_s27, %s2173_s24, %s3299_s19, %s3299_s19, %s3300_s26  }
 0x5d5 PF: > { %s4169_s4 = sld [smem:[#allocation24_spill]]  ;;  %p4172_p3 = scmp.ge.s32.totalorder %s3281_s16, 2 }
 0x5d6   : > { %s4170_s15 = sld [smem:[#allocation26_spill]] }
 0x5db   : > { %s2202_s10 = sand.u32 1, %s4169_s4  }
 0x5dc   : > { %p4171_p5 = scmp.ne.s32.totalorder %s4170_s15, 0  ;;  %s2203_s18 = scalar_lea.sflag [#allocation4], %s2202_s10 }
 0x5de   : > { %p2786_p7 = pnand %p4172_p3, %p4171_p5 }
 0x5e0   : > { %p2787_p2 = pneg %p2786_p7 }
 0x5e2   : > { %3264 = dma.done.wait (%p2787_p2), %s2203_s18, 2048  }
 0x5e3   : > { %3266 = vsyncadd (%p2787_p2), %s2203_s18, 4294965248  ;;  %s4173_s16 = sld [smem:[#allocation27_spill]]  ;;  %s4176_s13 = smov %s3273_s14 }
 0x5e4   : > { %s4174_s6 = sld [smem:[#allocation25_spill]] }
 0x5e5   : > { %s4175_s15 = sld [smem:[#allocation28_spill]] }
 0x5e9   : > { %p31_p13 = scmp.ge.s32.totalorder %s4173_s16, 4  }
 0x5ea   : > { %s4177_s14 = smov %s4174_s6 }
 0x5eb   :  { %33 = sbr.rel (!%p31_p13) target bundleno = 18 (0x12), region = 158 }
 0x5f0   :  { %2208 = vsyncpa [#allocation3], 1 }
 0x5f1   :  { %2210 = vsyncpa [#allocation3 + $0x1], 1 }
 0x5f2   :  { %2211 = vsyncpa [#allocation6], 1 }
 0x5f3   :  { %2213 = vsyncpa [#allocation6 + $0x1], 1 }
 0x5f4   :  { %2214 = vsyncpa [#allocation9], 1 }
 0x5f5   :  { %2216 = vsyncpa [#allocation9 + $0x1], 1 }
 0x5f6   :  { %2217 = vsyncpa [#allocation12], 1 }
 0x5f7   :  { %2218 = vsyncpa [#allocation15], 1 }
 0x5f8   :  { %2219 = vsyncpa [#allocation4], 1 }
 0x5f9   :  { %2221 = vsyncpa [#allocation4 + $0x1], 1 }

</bundles_post_ra>
